<compile_context>
chip_gen: v7x
topology: tpu7x:2x2x1
jax: 0.10.0
libtpu: 0.0.40
codegen_flags: <defaults>
</compile_context>

<pallas_src>
import functools

import jax
import jax.numpy as jnp
import numpy as np
from jax.experimental import pallas as pl
from jax.experimental.pallas import tpu as pltpu


_ALIGN = 16  # bf16 sublane tile -> every sub-block starts on a (16,128) tile


# ----------------------------------------------------------------------------
# Packed-parameter layout: one (total_rows, 128) bf16 slab.
# ----------------------------------------------------------------------------
def _param_layout(S, D, N):
    F = S + N * D
    blocks = [("Ws1sel", F, 64), ("bs1", 1, 64), ("Ws2", 64, 32), ("bs2", 1, 32),
              ("Ws3", 32, 16), ("bs3", 1, 16)]
    blocks += [(f"Wsel{j}", F, 128) for j in range(N)]      # fused att|obs layer 1
    blocks += [("bao1", 1, 128),
               ("Wa2", 64, 32), ("ba2", 1, 32), ("Wa3", 32, 16), ("ba3", 1, 16),
               ("Wo2", 64, 32), ("bo2", 1, 32), ("Wo3", 32, 16), ("bo3", 1, 16),
               ("Wf1", 32, 64), ("bf1", 1, 64), ("Wf2", 64, 32), ("bf2", 1, 32),
               ("Wf3", 32, 16), ("bf3", 1, 16), ("Wf4", 16, 2), ("bf4", 1, 2)]
    offs, shapes = {}, {}
    r = 0
    for name, rows, cols in blocks:
        offs[name] = r
        shapes[name] = (rows, cols)
        r = ((r + rows + _ALIGN - 1) // _ALIGN) * _ALIGN
    return offs, r, shapes


def pack_params(flat_params, S, D, N):
    """flat_params: 26 tensors in module order (state, attention, obs, final).
    Weights are (in_features, out_features), so y = x @ W + b."""
    F = S + N * D
    offs, total, shapes = _param_layout(S, D, N)
    p = [np.asarray(t, np.float32) for t in flat_params]

    Ws1sel = np.zeros((F, 64), np.float32)
    Ws1sel[:S, :] = p[0]                                    # robot-state selection
    Wao1 = np.concatenate([p[6], p[12]], axis=1)            # (D, 128)  [W_att1 | W_obs1]
    bao1 = np.concatenate([p[7], p[13]], axis=0)            # (128,)

    vals = {"Ws1sel": Ws1sel, "bs1": p[1], "Ws2": p[2], "bs2": p[3],
            "Ws3": p[4], "bs3": p[5], "bao1": bao1,
            "Wa2": p[8], "ba2": p[9], "Wa3": p[10], "ba3": p[11],
            "Wo2": p[14], "bo2": p[15], "Wo3": p[16], "bo3": p[17],
            "Wf1": p[18], "bf1": p[19], "Wf2": p[20], "bf2": p[21],
            "Wf3": p[22], "bf3": p[23], "Wf4": p[24], "bf4": p[25]}
    for j in range(N):
        Wsel = np.zeros((F, 128), np.float32)                # obstacle-j column selection
        Wsel[S + j * D: S + (j + 1) * D, :] = Wao1
        vals[f"Wsel{j}"] = Wsel

    slab = np.zeros((total, 128), np.float32)
    for name, (rows, cols) in shapes.items():
        r = offs[name]
        slab[r:r + rows, :cols] = vals[name].reshape(rows, cols)
    return jnp.asarray(slab, jnp.bfloat16)


# ----------------------------------------------------------------------------
# Kernel: whole forward pass for one batch tile.
# ----------------------------------------------------------------------------
def _robot_avoidance_kernel(obs_ref, params_ref, out_ref, *, S, D, N, offs, shapes):
    f32, bf16 = jnp.float32, jnp.bfloat16

    def rd(name, cols=None):                                 # static slab slice
        r = offs[name]
        rows, c = shapes[name]
        return params_ref[r:r + rows, 0:(c if cols is None else cols)]

    def dense_relu(x, wname, bname):                         # bf16 matmul, f32 acc
        y = jnp.dot(x.astype(bf16), rd(wname), preferred_element_type=f32)
        return jnp.maximum(y + rd(bname).astype(f32), 0.0)

    obs_bf = obs_ref[...].astype(bf16)                       # (B, F)
    B = obs_bf.shape[0]

    # ---- state_mlp: (B, S) -> (B, 16); column selection folded into Ws1sel ----
    r = jnp.maximum(jnp.dot(obs_bf, rd("Ws1sel"), preferred_element_type=f32)
                    + rd("bs1").astype(f32), 0.0)
    r = dense_relu(r, "Ws2", "bs2")
    robot16 = dense_relu(r, "Ws3", "bs3")                    # (B, 16)

    # ---- fused attention/obs first layer, obstacle-major rows (row j*B + b).
    # No lane gather: per-obstacle column selection lives in Wsel_j. ----
    pre = jnp.concatenate(
        [jnp.dot(obs_bf, rd(f"Wsel{j}"), preferred_element_type=f32)
         for j in range(N)], axis=0)                         # (L, 128), L = N*B
    bao1 = rd("bao1").astype(f32)                            # (1, 128)

    # ---- attention branch (cols 0:64 of the fused layer) ----
    a = jnp.maximum(pre[:, 0:64] + bao1[:, 0:64], 0.0)
    a = dense_relu(a, "Wa2", "ba2")
    a = dense_relu(a, "Wa3", "ba3")                          # (L, 16)
    z = jnp.sum(a, axis=1, keepdims=True)                    # (L, 1)

    # per-batch softmax over N obstacles: contiguous (B,1) segments, exact divide
    z_js = [z[j * B:(j + 1) * B, :] for j in range(N)]
    segmax = z_js[0]
    for zj in z_js[1:]:
        segmax = jnp.maximum(segmax, zj)
    e_js = [jnp.exp(zj - segmax) for zj in z_js]
    segsum = e_js[0]
    for ej in e_js[1:]:
        segsum = segsum + ej
    att = jnp.concatenate([ej / segsum for ej in e_js], axis=0)   # (L, 1)

    # ---- obs branch: (x*att) @ W == att * (x @ W), so scale the pre-activation ----
    o = jnp.maximum(att * pre[:, 64:128] + bao1[:, 64:128], 0.0)
    o = dense_relu(o, "Wo2", "bo2")
    o = dense_relu(o, "Wo3", "bo3")                          # (L, 16)

    # per-batch sum over obstacles (N contiguous (B,16) slices)
    obst16 = o[0:B, :]
    for j in range(1, N):
        obst16 = obst16 + o[j * B:(j + 1) * B, :]            # (B, 16)

    # ---- final_mlp_out; Wf1 split by rows to avoid a lane concat ----
    rf1 = offs["Wf1"]                                        # 16-row aligned
    wf1_r = params_ref[rf1:rf1 + 16, 0:64]                   # robot half
    wf1_o = params_ref[rf1 + 16:rf1 + 32, 0:64]              # obstacle half
    x = jnp.maximum(
        jnp.dot(robot16.astype(bf16), wf1_r, preferred_element_type=f32)
        + jnp.dot(obst16.astype(bf16), wf1_o, preferred_element_type=f32)
        + rd("bf1").astype(f32), 0.0)
    x = dense_relu(x, "Wf2", "bf2")
    x = dense_relu(x, "Wf3", "bf3")

    # lane-dense writeback: Wf4 / bf4 read with 128 zero-padded columns, so the
    # result is a full (tile, 128) block (lanes 2..127 are exactly zero).
    out = (jnp.dot(x.astype(bf16), rd("Wf4", 128), preferred_element_type=f32)
           + rd("bf4", 128).astype(f32))
    out_ref[...] = out.astype(out_ref.dtype)


# ----------------------------------------------------------------------------
# Wrapper: raw observations + packed slab in, (B, 2) out.
# ----------------------------------------------------------------------------
def _build_call(kernel, B, F, batch_tile, total_rows, params_pipeline_mode):
    if params_pipeline_mode is None:
        params_spec = pl.BlockSpec((total_rows, 128), lambda i: (0, 0))
    else:
        params_spec = pl.BlockSpec((total_rows, 128), lambda i: (0, 0),
                                   pipeline_mode=params_pipeline_mode)
    return pl.pallas_call(
        kernel,
        out_shape=jax.ShapeDtypeStruct((B, 128), jnp.float32),
        grid_spec=pltpu.PrefetchScalarGridSpec(
            num_scalar_prefetch=0,
            grid=(B // batch_tile,),
            in_specs=[pl.BlockSpec((batch_tile, F), lambda i: (i, 0)),
                      params_spec],
            out_specs=pl.BlockSpec((batch_tile, 128), lambda i: (i, 0)),
        ),
        compiler_params=pltpu.CompilerParams(
            dimension_semantics=("parallel",)),
    )


def robot_avoidance_forward(observations, packed_params, obs_robot_state_size,
                            obs_obstacle_data_size, batch_tile=None):
    B, F = observations.shape
    S, D = obs_robot_state_size, obs_obstacle_data_size
    assert (F - S) % D == 0
    N = (F - S) // D

    offs, total_rows, shapes = _param_layout(S, D, N)
    assert packed_params.shape == (total_rows, 128)

    if batch_tile is None:
        if B % 8 == 0 and B >= 16:
            # >= 2 grid steps (both v7x TensorCores busy); tile capped at 512 rows.
            target = min(512, B // 2)
            batch_tile = (target // 8) * 8
            while B % batch_tile:
                batch_tile -= 8
        else:
            batch_tile = B                                   # tiny batch: one tile
    assert B % batch_tile == 0

    kernel = functools.partial(_robot_avoidance_kernel,
                               S=S, D=D, N=N, offs=offs, shapes=shapes)
    try:
        call = _build_call(kernel, B, F, batch_tile, total_rows, pl.Buffered(1))
        out = call(observations, packed_params)
    except Exception:
        # pipeline_mode / Buffered(1) unsupported on this JAX version: fall back.
        out = _build_call(kernel, B, F, batch_tile, total_rows, None)(
            observations, packed_params)
    return out[:, :2]


# ----------------------------------------------------------------------------
# Deterministic parameter init (mirrors the module's layer shapes; W is
# (in_features, out_features) so y = x @ W + b).
# ----------------------------------------------------------------------------
def init_params(key, S, D):
    dims = [
        (S, 64), (64, 32), (32, 16),            # state_mlp
        (D, 64), (64, 32), (32, 16),            # attention_obs_mlp
        (D, 64), (64, 32), (32, 16),            # obs_mlp
        (32, 64), (64, 32), (32, 16), (16, 2),  # final_mlp_out
    ]
    params = []
    for fi, fo in dims:
        key, kw, kb = jax.random.split(key, 3)
        params.append(jax.random.uniform(kw, (fi, fo), jnp.float32, -0.1, 0.1))
        params.append(jax.random.uniform(kb, (fo,), jnp.float32, -0.1, 0.1))
    return params


# ----------------------------------------------------------------------------
# Pure-JAX f32 reference (mirrors the PyTorch forward exactly)
# ----------------------------------------------------------------------------
def reference_forward(observations, flat_params, S, D):
    def mlp3(x, p, off):
        for i in range(3):
            x = jnp.maximum(x @ p[off + 2 * i] + p[off + 2 * i + 1], 0.0)
        return x

    B, F = observations.shape
    N = (F - S) // D
    robot = observations[:, :S]
    obst = observations[:, S:].reshape(B, N, D)

    robot = mlp3(robot, flat_params, 0)
    attn = jax.nn.softmax(
        jnp.sum(mlp3(obst, flat_params, 6), axis=2, keepdims=True), axis=1)
    obst = mlp3(obst * attn, flat_params, 12)
    obst = jnp.sum(obst, axis=1)
    x = jnp.concatenate([robot, obst], axis=1)
    x = jnp.maximum(x @ flat_params[18] + flat_params[19], 0.0)
    x = jnp.maximum(x @ flat_params[20] + flat_params[21], 0.0)
    x = jnp.maximum(x @ flat_params[22] + flat_params[23], 0.0)
    return x @ flat_params[24] + flat_params[25]


if __name__ == "__main__":
    S = 6          # obs_robot_state_size
    D = 4          # obs_obstacle_data_size
    N = 8          # num_obstacles
    F = S + N * D

    key = jax.random.PRNGKey(0)
    k_obs, k_par = jax.random.split(key)
    flat_params = init_params(k_par, S, D)
    packed = pack_params(flat_params, S, D, N)

    # Small single-tile case (B=2) and a multi-step grid case (B=64 -> 2 tiles).
    for B in (2, 64):
        observations = jax.random.normal(jax.random.fold_in(k_obs, B), (B, F),
                                         jnp.float32)
        out = jax.block_until_ready(
            robot_avoidance_forward(observations, packed, S, D))
        ref = reference_forward(observations, flat_params, S, D)
        assert out.shape == (B, 2)
        # bf16 matmul operands (f32 accumulation) vs. the pure-f32 reference.
        assert jnp.allclose(out, ref, rtol=2e-2, atol=5e-3), (B, out, ref)
    print("KERNEL_OK")
</pallas_src>

<mosaic_0001>
module attributes {stable_mosaic.version = 11 : i64} {
  func.func @_robot_avoidance_kernel(%arg0: i32, %arg1: memref<2x38xf32, #tpu.memory_space<vmem>>, %arg2: memref<1056x128xbf16, #tpu.memory_space<vmem>>, %arg3: memref<2x128xf32, #tpu.memory_space<vmem>>) attributes {dimension_semantics = [#tpu.dimension_semantics<parallel>], iteration_bounds = array<i64: 1>, scalar_prefetch = 0 : i64, scratch_operands = 0 : i64, tpu.core_type = #tpu.core_type<tc>, window_params = [{transform_indices = @transform_0, window_bounds = array<i64: 2, 38>}, {pipeline_mode = #tpu.pipeline_mode<synchronous>, transform_indices = @transform_1, window_bounds = array<i64: 1056, 128>}, {transform_indices = @transform_2, window_bounds = array<i64: 2, 128>}]} {
    %c0 = arith.constant 0 : index
    %c0_0 = arith.constant 0 : index
    %0 = vector.load %arg1[%c0, %c0_0] : memref<2x38xf32, #tpu.memory_space<vmem>>, vector<2x38xf32>
    %1 = arith.truncf %0 : vector<2x38xf32> to vector<2x38xbf16>
    %c0_1 = arith.constant 0 : index
    %c0_2 = arith.constant 0 : index
    %2 = vector.load %arg2[%c0_1, %c0_2] : memref<1056x128xbf16, #tpu.memory_space<vmem>>, vector<38x64xbf16>
    %cst = arith.constant dense<0.000000e+00> : vector<2x64xf32>
    %3 = tpu.matmul %1, %2, %cst {dimension_numbers = #tpu.dot_dimension_numbers<[1], [0], [0], [1], [0, 0, 1, 1], [], []>} : vector<2x38xbf16>, vector<38x64xbf16>, vector<2x64xf32> -> vector<2x64xf32>
    %c48 = arith.constant 48 : index
    %c0_3 = arith.constant 0 : index
    %4 = vector.load %arg2[%c48, %c0_3] : memref<1056x128xbf16, #tpu.memory_space<vmem>>, vector<1x64xbf16>
    %5 = arith.extf %4 : vector<1x64xbf16> to vector<1x64xf32>
    %6 = vector.broadcast %5 : vector<1x64xf32> to vector<2x64xf32>
    %7 = arith.addf %3, %6 : vector<2x64xf32>
    %cst_4 = arith.constant 0.000000e+00 : f32
    %8 = vector.broadcast %cst_4 : f32 to vector<2x64xf32>
    %9 = arith.maximumf %7, %8 : vector<2x64xf32>
    %10 = arith.truncf %9 : vector<2x64xf32> to vector<2x64xbf16>
    %c64 = arith.constant 64 : index
    %c0_5 = arith.constant 0 : index
    %11 = vector.load %arg2[%c64, %c0_5] : memref<1056x128xbf16, #tpu.memory_space<vmem>>, vector<64x32xbf16>
    %cst_6 = arith.constant dense<0.000000e+00> : vector<2x32xf32>
    %12 = tpu.matmul %10, %11, %cst_6 {dimension_numbers = #tpu.dot_dimension_numbers<[1], [0], [0], [1], [0, 0, 1, 1], [], []>} : vector<2x64xbf16>, vector<64x32xbf16>, vector<2x32xf32> -> vector<2x32xf32>
    %c128 = arith.constant 128 : index
    %c0_7 = arith.constant 0 : index
    %13 = vector.load %arg2[%c128, %c0_7] : memref<1056x128xbf16, #tpu.memory_space<vmem>>, vector<1x32xbf16>
    %14 = arith.extf %13 : vector<1x32xbf16> to vector<1x32xf32>
    %15 = vector.broadcast %14 : vector<1x32xf32> to vector<2x32xf32>
    %16 = arith.addf %12, %15 : vector<2x32xf32>
    %cst_8 = arith.constant 0.000000e+00 : f32
    %17 = vector.broadcast %cst_8 : f32 to vector<2x32xf32>
    %18 = arith.maximumf %16, %17 : vector<2x32xf32>
    %19 = arith.truncf %18 : vector<2x32xf32> to vector<2x32xbf16>
    %c144 = arith.constant 144 : index
    %c0_9 = arith.constant 0 : index
    %20 = vector.load %arg2[%c144, %c0_9] : memref<1056x128xbf16, #tpu.memory_space<vmem>>, vector<32x16xbf16>
    %cst_10 = arith.constant dense<0.000000e+00> : vector<2x16xf32>
    %21 = tpu.matmul %19, %20, %cst_10 {dimension_numbers = #tpu.dot_dimension_numbers<[1], [0], [0], [1], [0, 0, 1, 1], [], []>} : vector<2x32xbf16>, vector<32x16xbf16>, vector<2x16xf32> -> vector<2x16xf32>
    %c176 = arith.constant 176 : index
    %c0_11 = arith.constant 0 : index
    %22 = vector.load %arg2[%c176, %c0_11] : memref<1056x128xbf16, #tpu.memory_space<vmem>>, vector<1x16xbf16>
    %23 = arith.extf %22 : vector<1x16xbf16> to vector<1x16xf32>
    %24 = vector.broadcast %23 : vector<1x16xf32> to vector<2x16xf32>
    %25 = arith.addf %21, %24 : vector<2x16xf32>
    %cst_12 = arith.constant 0.000000e+00 : f32
    %26 = vector.broadcast %cst_12 : f32 to vector<2x16xf32>
    %27 = arith.maximumf %25, %26 : vector<2x16xf32>
    %c192 = arith.constant 192 : index
    %c0_13 = arith.constant 0 : index
    %28 = vector.load %arg2[%c192, %c0_13] : memref<1056x128xbf16, #tpu.memory_space<vmem>>, vector<38x128xbf16>
    %cst_14 = arith.constant dense<0.000000e+00> : vector<2x128xf32>
    %29 = tpu.matmul %1, %28, %cst_14 {dimension_numbers = #tpu.dot_dimension_numbers<[1], [0], [0], [1], [0, 0, 1, 1], [], []>} : vector<2x38xbf16>, vector<38x128xbf16>, vector<2x128xf32> -> vector<2x128xf32>
    %c240 = arith.constant 240 : index
    %c0_15 = arith.constant 0 : index
    %30 = vector.load %arg2[%c240, %c0_15] : memref<1056x128xbf16, #tpu.memory_space<vmem>>, vector<38x128xbf16>
    %cst_16 = arith.constant dense<0.000000e+00> : vector<2x128xf32>
    %31 = tpu.matmul %1, %30, %cst_16 {dimension_numbers = #tpu.dot_dimension_numbers<[1], [0], [0], [1], [0, 0, 1, 1], [], []>} : vector<2x38xbf16>, vector<38x128xbf16>, vector<2x128xf32> -> vector<2x128xf32>
    %c288 = arith.constant 288 : index
    %c0_17 = arith.constant 0 : index
    %32 = vector.load %arg2[%c288, %c0_17] : memref<1056x128xbf16, #tpu.memory_space<vmem>>, vector<38x128xbf16>
    %cst_18 = arith.constant dense<0.000000e+00> : vector<2x128xf32>
    %33 = tpu.matmul %1, %32, %cst_18 {dimension_numbers = #tpu.dot_dimension_numbers<[1], [0], [0], [1], [0, 0, 1, 1], [], []>} : vector<2x38xbf16>, vector<38x128xbf16>, vector<2x128xf32> -> vector<2x128xf32>
    %c336 = arith.constant 336 : index
    %c0_19 = arith.constant 0 : index
    %34 = vector.load %arg2[%c336, %c0_19] : memref<1056x128xbf16, #tpu.memory_space<vmem>>, vector<38x128xbf16>
    %cst_20 = arith.constant dense<0.000000e+00> : vector<2x128xf32>
    %35 = tpu.matmul %1, %34, %cst_20 {dimension_numbers = #tpu.dot_dimension_numbers<[1], [0], [0], [1], [0, 0, 1, 1], [], []>} : vector<2x38xbf16>, vector<38x128xbf16>, vector<2x128xf32> -> vector<2x128xf32>
    %c384 = arith.constant 384 : index
    %c0_21 = arith.constant 0 : index
    %36 = vector.load %arg2[%c384, %c0_21] : memref<1056x128xbf16, #tpu.memory_space<vmem>>, vector<38x128xbf16>
    %cst_22 = arith.constant dense<0.000000e+00> : vector<2x128xf32>
    %37 = tpu.matmul %1, %36, %cst_22 {dimension_numbers = #tpu.dot_dimension_numbers<[1], [0], [0], [1], [0, 0, 1, 1], [], []>} : vector<2x38xbf16>, vector<38x128xbf16>, vector<2x128xf32> -> vector<2x128xf32>
    %c432 = arith.constant 432 : index
    %c0_23 = arith.constant 0 : index
    %38 = vector.load %arg2[%c432, %c0_23] : memref<1056x128xbf16, #tpu.memory_space<vmem>>, vector<38x128xbf16>
    %cst_24 = arith.constant dense<0.000000e+00> : vector<2x128xf32>
    %39 = tpu.matmul %1, %38, %cst_24 {dimension_numbers = #tpu.dot_dimension_numbers<[1], [0], [0], [1], [0, 0, 1, 1], [], []>} : vector<2x38xbf16>, vector<38x128xbf16>, vector<2x128xf32> -> vector<2x128xf32>
    %c480 = arith.constant 480 : index
    %c0_25 = arith.constant 0 : index
    %40 = vector.load %arg2[%c480, %c0_25] : memref<1056x128xbf16, #tpu.memory_space<vmem>>, vector<38x128xbf16>
    %cst_26 = arith.constant dense<0.000000e+00> : vector<2x128xf32>
    %41 = tpu.matmul %1, %40, %cst_26 {dimension_numbers = #tpu.dot_dimension_numbers<[1], [0], [0], [1], [0, 0, 1, 1], [], []>} : vector<2x38xbf16>, vector<38x128xbf16>, vector<2x128xf32> -> vector<2x128xf32>
    %c528 = arith.constant 528 : index
    %c0_27 = arith.constant 0 : index
    %42 = vector.load %arg2[%c528, %c0_27] : memref<1056x128xbf16, #tpu.memory_space<vmem>>, vector<38x128xbf16>
    %cst_28 = arith.constant dense<0.000000e+00> : vector<2x128xf32>
    %43 = tpu.matmul %1, %42, %cst_28 {dimension_numbers = #tpu.dot_dimension_numbers<[1], [0], [0], [1], [0, 0, 1, 1], [], []>} : vector<2x38xbf16>, vector<38x128xbf16>, vector<2x128xf32> -> vector<2x128xf32>
    %44 = tpu.concatenate %29, %31, %33, %35, %37, %39, %41, %43 in 0 : vector<2x128xf32>, vector<2x128xf32>, vector<2x128xf32>, vector<2x128xf32>, vector<2x128xf32>, vector<2x128xf32>, vector<2x128xf32>, vector<2x128xf32> -> vector<16x128xf32>
    %c576 = arith.constant 576 : index
    %c0_29 = arith.constant 0 : index
    %45 = vector.load %arg2[%c576, %c0_29] : memref<1056x128xbf16, #tpu.memory_space<vmem>>, vector<1x128xbf16>
    %46 = arith.extf %45 : vector<1x128xbf16> to vector<1x128xf32>
    %47 = vector.extract_strided_slice %44 {offsets = [0, 0], sizes = [16, 64], strides = [1, 1]} : vector<16x128xf32> to vector<16x64xf32>
    %48 = vector.extract_strided_slice %46 {offsets = [0, 0], sizes = [1, 64], strides = [1, 1]} : vector<1x128xf32> to vector<1x64xf32>
    %49 = vector.broadcast %48 : vector<1x64xf32> to vector<16x64xf32>
    %50 = arith.addf %47, %49 : vector<16x64xf32>
    %cst_30 = arith.constant 0.000000e+00 : f32
    %51 = vector.broadcast %cst_30 : f32 to vector<16x64xf32>
    %52 = arith.maximumf %50, %51 : vector<16x64xf32>
    %53 = arith.truncf %52 : vector<16x64xf32> to vector<16x64xbf16>
    %c592 = arith.constant 592 : index
    %c0_31 = arith.constant 0 : index
    %54 = vector.load %arg2[%c592, %c0_31] : memref<1056x128xbf16, #tpu.memory_space<vmem>>, vector<64x32xbf16>
    %cst_32 = arith.constant dense<0.000000e+00> : vector<16x32xf32>
    %55 = tpu.matmul %53, %54, %cst_32 {dimension_numbers = #tpu.dot_dimension_numbers<[1], [0], [0], [1], [0, 0, 1, 1], [], []>} : vector<16x64xbf16>, vector<64x32xbf16>, vector<16x32xf32> -> vector<16x32xf32>
    %c656 = arith.constant 656 : index
    %c0_33 = arith.constant 0 : index
    %56 = vector.load %arg2[%c656, %c0_33] : memref<1056x128xbf16, #tpu.memory_space<vmem>>, vector<1x32xbf16>
    %57 = arith.extf %56 : vector<1x32xbf16> to vector<1x32xf32>
    %58 = vector.broadcast %57 : vector<1x32xf32> to vector<16x32xf32>
    %59 = arith.addf %55, %58 : vector<16x32xf32>
    %cst_34 = arith.constant 0.000000e+00 : f32
    %60 = vector.broadcast %cst_34 : f32 to vector<16x32xf32>
    %61 = arith.maximumf %59, %60 : vector<16x32xf32>
    %62 = arith.truncf %61 : vector<16x32xf32> to vector<16x32xbf16>
    %c672 = arith.constant 672 : index
    %c0_35 = arith.constant 0 : index
    %63 = vector.load %arg2[%c672, %c0_35] : memref<1056x128xbf16, #tpu.memory_space<vmem>>, vector<32x16xbf16>
    %cst_36 = arith.constant dense<0.000000e+00> : vector<16x16xf32>
    %64 = tpu.matmul %62, %63, %cst_36 {dimension_numbers = #tpu.dot_dimension_numbers<[1], [0], [0], [1], [0, 0, 1, 1], [], []>} : vector<16x32xbf16>, vector<32x16xbf16>, vector<16x16xf32> -> vector<16x16xf32>
    %c704 = arith.constant 704 : index
    %c0_37 = arith.constant 0 : index
    %65 = vector.load %arg2[%c704, %c0_37] : memref<1056x128xbf16, #tpu.memory_space<vmem>>, vector<1x16xbf16>
    %66 = arith.extf %65 : vector<1x16xbf16> to vector<1x16xf32>
    %67 = vector.broadcast %66 : vector<1x16xf32> to vector<16x16xf32>
    %68 = arith.addf %64, %67 : vector<16x16xf32>
    %cst_38 = arith.constant 0.000000e+00 : f32
    %69 = vector.broadcast %cst_38 : f32 to vector<16x16xf32>
    %70 = arith.maximumf %68, %69 : vector<16x16xf32>
    %cst_39 = arith.constant dense<0.000000e+00> : vector<16xf32>
    %71 = vector.multi_reduction <add>, %70, %cst_39 [1] : vector<16x16xf32> to vector<16xf32>
    %72 = vector.shape_cast %71 : vector<16xf32> to vector<16x1xf32>
    %73 = vector.extract_strided_slice %72 {offsets = [0, 0], sizes = [2, 1], strides = [1, 1]} : vector<16x1xf32> to vector<2x1xf32>
    %74 = vector.extract_strided_slice %72 {offsets = [2, 0], sizes = [2, 1], strides = [1, 1]} : vector<16x1xf32> to vector<2x1xf32>
    %75 = vector.extract_strided_slice %72 {offsets = [4, 0], sizes = [2, 1], strides = [1, 1]} : vector<16x1xf32> to vector<2x1xf32>
    %76 = vector.extract_strided_slice %72 {offsets = [6, 0], sizes = [2, 1], strides = [1, 1]} : vector<16x1xf32> to vector<2x1xf32>
    %77 = vector.extract_strided_slice %72 {offsets = [8, 0], sizes = [2, 1], strides = [1, 1]} : vector<16x1xf32> to vector<2x1xf32>
    %78 = vector.extract_strided_slice %72 {offsets = [10, 0], sizes = [2, 1], strides = [1, 1]} : vector<16x1xf32> to vector<2x1xf32>
    %79 = vector.extract_strided_slice %72 {offsets = [12, 0], sizes = [2, 1], strides = [1, 1]} : vector<16x1xf32> to vector<2x1xf32>
    %80 = vector.extract_strided_slice %72 {offsets = [14, 0], sizes = [2, 1], strides = [1, 1]} : vector<16x1xf32> to vector<2x1xf32>
    %81 = arith.maximumf %73, %74 : vector<2x1xf32>
    %82 = arith.maximumf %81, %75 : vector<2x1xf32>
    %83 = arith.maximumf %82, %76 : vector<2x1xf32>
    %84 = arith.maximumf %83, %77 : vector<2x1xf32>
    %85 = arith.maximumf %84, %78 : vector<2x1xf32>
    %86 = arith.maximumf %85, %79 : vector<2x1xf32>
    %87 = arith.maximumf %86, %80 : vector<2x1xf32>
    %88 = arith.subf %73, %87 : vector<2x1xf32>
    %89 = math.exp %88 : vector<2x1xf32>
    %90 = arith.subf %74, %87 : vector<2x1xf32>
    %91 = math.exp %90 : vector<2x1xf32>
    %92 = arith.subf %75, %87 : vector<2x1xf32>
    %93 = math.exp %92 : vector<2x1xf32>
    %94 = arith.subf %76, %87 : vector<2x1xf32>
    %95 = math.exp %94 : vector<2x1xf32>
    %96 = arith.subf %77, %87 : vector<2x1xf32>
    %97 = math.exp %96 : vector<2x1xf32>
    %98 = arith.subf %78, %87 : vector<2x1xf32>
    %99 = math.exp %98 : vector<2x1xf32>
    %100 = arith.subf %79, %87 : vector<2x1xf32>
    %101 = math.exp %100 : vector<2x1xf32>
    %102 = arith.subf %80, %87 : vector<2x1xf32>
    %103 = math.exp %102 : vector<2x1xf32>
    %104 = arith.addf %89, %91 : vector<2x1xf32>
    %105 = arith.addf %104, %93 : vector<2x1xf32>
    %106 = arith.addf %105, %95 : vector<2x1xf32>
    %107 = arith.addf %106, %97 : vector<2x1xf32>
    %108 = arith.addf %107, %99 : vector<2x1xf32>
    %109 = arith.addf %108, %101 : vector<2x1xf32>
    %110 = arith.addf %109, %103 : vector<2x1xf32>
    %111 = arith.divf %89, %110 : vector<2x1xf32>
    %112 = arith.divf %91, %110 : vector<2x1xf32>
    %113 = arith.divf %93, %110 : vector<2x1xf32>
    %114 = arith.divf %95, %110 : vector<2x1xf32>
    %115 = arith.divf %97, %110 : vector<2x1xf32>
    %116 = arith.divf %99, %110 : vector<2x1xf32>
    %117 = arith.divf %101, %110 : vector<2x1xf32>
    %118 = arith.divf %103, %110 : vector<2x1xf32>
    %119 = tpu.concatenate %111, %112, %113, %114, %115, %116, %117, %118 in 0 : vector<2x1xf32>, vector<2x1xf32>, vector<2x1xf32>, vector<2x1xf32>, vector<2x1xf32>, vector<2x1xf32>, vector<2x1xf32>, vector<2x1xf32> -> vector<16x1xf32>
    %120 = vector.extract_strided_slice %44 {offsets = [0, 64], sizes = [16, 64], strides = [1, 1]} : vector<16x128xf32> to vector<16x64xf32>
    %121 = vector.broadcast %119 : vector<16x1xf32> to vector<16x64xf32>
    %122 = arith.mulf %121, %120 : vector<16x64xf32>
    %123 = vector.extract_strided_slice %46 {offsets = [0, 64], sizes = [1, 64], strides = [1, 1]} : vector<1x128xf32> to vector<1x64xf32>
    %124 = vector.broadcast %123 : vector<1x64xf32> to vector<16x64xf32>
    %125 = arith.addf %122, %124 : vector<16x64xf32>
    %cst_40 = arith.constant 0.000000e+00 : f32
    %126 = vector.broadcast %cst_40 : f32 to vector<16x64xf32>
    %127 = arith.maximumf %125, %126 : vector<16x64xf32>
    %128 = arith.truncf %127 : vector<16x64xf32> to vector<16x64xbf16>
    %c720 = arith.constant 720 : index
    %c0_41 = arith.constant 0 : index
    %129 = vector.load %arg2[%c720, %c0_41] : memref<1056x128xbf16, #tpu.memory_space<vmem>>, vector<64x32xbf16>
    %cst_42 = arith.constant dense<0.000000e+00> : vector<16x32xf32>
    %130 = tpu.matmul %128, %129, %cst_42 {dimension_numbers = #tpu.dot_dimension_numbers<[1], [0], [0], [1], [0, 0, 1, 1], [], []>} : vector<16x64xbf16>, vector<64x32xbf16>, vector<16x32xf32> -> vector<16x32xf32>
    %c784 = arith.constant 784 : index
    %c0_43 = arith.constant 0 : index
    %131 = vector.load %arg2[%c784, %c0_43] : memref<1056x128xbf16, #tpu.memory_space<vmem>>, vector<1x32xbf16>
    %132 = arith.extf %131 : vector<1x32xbf16> to vector<1x32xf32>
    %133 = vector.broadcast %132 : vector<1x32xf32> to vector<16x32xf32>
    %134 = arith.addf %130, %133 : vector<16x32xf32>
    %cst_44 = arith.constant 0.000000e+00 : f32
    %135 = vector.broadcast %cst_44 : f32 to vector<16x32xf32>
    %136 = arith.maximumf %134, %135 : vector<16x32xf32>
    %137 = arith.truncf %136 : vector<16x32xf32> to vector<16x32xbf16>
    %c800 = arith.constant 800 : index
    %c0_45 = arith.constant 0 : index
    %138 = vector.load %arg2[%c800, %c0_45] : memref<1056x128xbf16, #tpu.memory_space<vmem>>, vector<32x16xbf16>
    %cst_46 = arith.constant dense<0.000000e+00> : vector<16x16xf32>
    %139 = tpu.matmul %137, %138, %cst_46 {dimension_numbers = #tpu.dot_dimension_numbers<[1], [0], [0], [1], [0, 0, 1, 1], [], []>} : vector<16x32xbf16>, vector<32x16xbf16>, vector<16x16xf32> -> vector<16x16xf32>
    %c832 = arith.constant 832 : index
    %c0_47 = arith.constant 0 : index
    %140 = vector.load %arg2[%c832, %c0_47] : memref<1056x128xbf16, #tpu.memory_space<vmem>>, vector<1x16xbf16>
    %141 = arith.extf %140 : vector<1x16xbf16> to vector<1x16xf32>
    %142 = vector.broadcast %141 : vector<1x16xf32> to vector<16x16xf32>
    %143 = arith.addf %139, %142 : vector<16x16xf32>
    %cst_48 = arith.constant 0.000000e+00 : f32
    %144 = vector.broadcast %cst_48 : f32 to vector<16x16xf32>
    %145 = arith.maximumf %143, %144 : vector<16x16xf32>
    %146 = vector.extract_strided_slice %145 {offsets = [0, 0], sizes = [2, 16], strides = [1, 1]} : vector<16x16xf32> to vector<2x16xf32>
    %147 = vector.extract_strided_slice %145 {offsets = [2, 0], sizes = [2, 16], strides = [1, 1]} : vector<16x16xf32> to vector<2x16xf32>
    %148 = arith.addf %146, %147 : vector<2x16xf32>
    %149 = vector.extract_strided_slice %145 {offsets = [4, 0], sizes = [2, 16], strides = [1, 1]} : vector<16x16xf32> to vector<2x16xf32>
    %150 = arith.addf %148, %149 : vector<2x16xf32>
    %151 = vector.extract_strided_slice %145 {offsets = [6, 0], sizes = [2, 16], strides = [1, 1]} : vector<16x16xf32> to vector<2x16xf32>
    %152 = arith.addf %150, %151 : vector<2x16xf32>
    %153 = vector.extract_strided_slice %145 {offsets = [8, 0], sizes = [2, 16], strides = [1, 1]} : vector<16x16xf32> to vector<2x16xf32>
    %154 = arith.addf %152, %153 : vector<2x16xf32>
    %155 = vector.extract_strided_slice %145 {offsets = [10, 0], sizes = [2, 16], strides = [1, 1]} : vector<16x16xf32> to vector<2x16xf32>
    %156 = arith.addf %154, %155 : vector<2x16xf32>
    %157 = vector.extract_strided_slice %145 {offsets = [12, 0], sizes = [2, 16], strides = [1, 1]} : vector<16x16xf32> to vector<2x16xf32>
    %158 = arith.addf %156, %157 : vector<2x16xf32>
    %159 = vector.extract_strided_slice %145 {offsets = [14, 0], sizes = [2, 16], strides = [1, 1]} : vector<16x16xf32> to vector<2x16xf32>
    %160 = arith.addf %158, %159 : vector<2x16xf32>
    %c848 = arith.constant 848 : index
    %c0_49 = arith.constant 0 : index
    %161 = vector.load %arg2[%c848, %c0_49] : memref<1056x128xbf16, #tpu.memory_space<vmem>>, vector<16x64xbf16>
    %c864 = arith.constant 864 : index
    %c0_50 = arith.constant 0 : index
    %162 = vector.load %arg2[%c864, %c0_50] : memref<1056x128xbf16, #tpu.memory_space<vmem>>, vector<16x64xbf16>
    %163 = arith.truncf %27 : vector<2x16xf32> to vector<2x16xbf16>
    %cst_51 = arith.constant dense<0.000000e+00> : vector<2x64xf32>
    %164 = tpu.matmul %163, %161, %cst_51 {dimension_numbers = #tpu.dot_dimension_numbers<[1], [0], [0], [1], [0, 0, 1, 1], [], []>} : vector<2x16xbf16>, vector<16x64xbf16>, vector<2x64xf32> -> vector<2x64xf32>
    %165 = arith.truncf %160 : vector<2x16xf32> to vector<2x16xbf16>
    %cst_52 = arith.constant dense<0.000000e+00> : vector<2x64xf32>
    %166 = tpu.matmul %165, %162, %cst_52 {dimension_numbers = #tpu.dot_dimension_numbers<[1], [0], [0], [1], [0, 0, 1, 1], [], []>} : vector<2x16xbf16>, vector<16x64xbf16>, vector<2x64xf32> -> vector<2x64xf32>
    %167 = arith.addf %164, %166 : vector<2x64xf32>
    %c880 = arith.constant 880 : index
    %c0_53 = arith.constant 0 : index
    %168 = vector.load %arg2[%c880, %c0_53] : memref<1056x128xbf16, #tpu.memory_space<vmem>>, vector<1x64xbf16>
    %169 = arith.extf %168 : vector<1x64xbf16> to vector<1x64xf32>
    %170 = vector.broadcast %169 : vector<1x64xf32> to vector<2x64xf32>
    %171 = arith.addf %167, %170 : vector<2x64xf32>
    %cst_54 = arith.constant 0.000000e+00 : f32
    %172 = vector.broadcast %cst_54 : f32 to vector<2x64xf32>
    %173 = arith.maximumf %171, %172 : vector<2x64xf32>
    %174 = arith.truncf %173 : vector<2x64xf32> to vector<2x64xbf16>
    %c896 = arith.constant 896 : index
    %c0_55 = arith.constant 0 : index
    %175 = vector.load %arg2[%c896, %c0_55] : memref<1056x128xbf16, #tpu.memory_space<vmem>>, vector<64x32xbf16>
    %cst_56 = arith.constant dense<0.000000e+00> : vector<2x32xf32>
    %176 = tpu.matmul %174, %175, %cst_56 {dimension_numbers = #tpu.dot_dimension_numbers<[1], [0], [0], [1], [0, 0, 1, 1], [], []>} : vector<2x64xbf16>, vector<64x32xbf16>, vector<2x32xf32> -> vector<2x32xf32>
    %c960 = arith.constant 960 : index
    %c0_57 = arith.constant 0 : index
    %177 = vector.load %arg2[%c960, %c0_57] : memref<1056x128xbf16, #tpu.memory_space<vmem>>, vector<1x32xbf16>
    %178 = arith.extf %177 : vector<1x32xbf16> to vector<1x32xf32>
    %179 = vector.broadcast %178 : vector<1x32xf32> to vector<2x32xf32>
    %180 = arith.addf %176, %179 : vector<2x32xf32>
    %cst_58 = arith.constant 0.000000e+00 : f32
    %181 = vector.broadcast %cst_58 : f32 to vector<2x32xf32>
    %182 = arith.maximumf %180, %181 : vector<2x32xf32>
    %183 = arith.truncf %182 : vector<2x32xf32> to vector<2x32xbf16>
    %c976 = arith.constant 976 : index
    %c0_59 = arith.constant 0 : index
    %184 = vector.load %arg2[%c976, %c0_59] : memref<1056x128xbf16, #tpu.memory_space<vmem>>, vector<32x16xbf16>
    %cst_60 = arith.constant dense<0.000000e+00> : vector<2x16xf32>
    %185 = tpu.matmul %183, %184, %cst_60 {dimension_numbers = #tpu.dot_dimension_numbers<[1], [0], [0], [1], [0, 0, 1, 1], [], []>} : vector<2x32xbf16>, vector<32x16xbf16>, vector<2x16xf32> -> vector<2x16xf32>
    %c1008 = arith.constant 1008 : index
    %c0_61 = arith.constant 0 : index
    %186 = vector.load %arg2[%c1008, %c0_61] : memref<1056x128xbf16, #tpu.memory_space<vmem>>, vector<1x16xbf16>
    %187 = arith.extf %186 : vector<1x16xbf16> to vector<1x16xf32>
    %188 = vector.broadcast %187 : vector<1x16xf32> to vector<2x16xf32>
    %189 = arith.addf %185, %188 : vector<2x16xf32>
    %cst_62 = arith.constant 0.000000e+00 : f32
    %190 = vector.broadcast %cst_62 : f32 to vector<2x16xf32>
    %191 = arith.maximumf %189, %190 : vector<2x16xf32>
    %192 = arith.truncf %191 : vector<2x16xf32> to vector<2x16xbf16>
    %c1024 = arith.constant 1024 : index
    %c0_63 = arith.constant 0 : index
    %193 = vector.load %arg2[%c1024, %c0_63] : memref<1056x128xbf16, #tpu.memory_space<vmem>>, vector<16x128xbf16>
    %cst_64 = arith.constant dense<0.000000e+00> : vector<2x128xf32>
    %194 = tpu.matmul %192, %193, %cst_64 {dimension_numbers = #tpu.dot_dimension_numbers<[1], [0], [0], [1], [0, 0, 1, 1], [], []>} : vector<2x16xbf16>, vector<16x128xbf16>, vector<2x128xf32> -> vector<2x128xf32>
    %c1040 = arith.constant 1040 : index
    %c0_65 = arith.constant 0 : index
    %195 = vector.load %arg2[%c1040, %c0_65] : memref<1056x128xbf16, #tpu.memory_space<vmem>>, vector<1x128xbf16>
    %196 = arith.extf %195 : vector<1x128xbf16> to vector<1x128xf32>
    %197 = vector.broadcast %196 : vector<1x128xf32> to vector<2x128xf32>
    %198 = arith.addf %194, %197 : vector<2x128xf32>
    %c0_66 = arith.constant 0 : index
    %c0_67 = arith.constant 0 : index
    %199 = vector.load %arg3[%c0_66, %c0_67] : memref<2x128xf32, #tpu.memory_space<vmem>>, vector<2x128xf32>
    tpu.vector_store %arg3[%c0_66, %c0_67], %198 {strides = array<i32>} : memref<2x128xf32, #tpu.memory_space<vmem>>, vector<2x128xf32>,
    return
  }
  func.func @transform_0(%arg0: i32) -> (i32, i32) {
    %c0_i32 = arith.constant 0 : i32
    %c0_i32_0 = arith.constant 0 : i32
    return %arg0, %c0_i32 : i32, i32
  }
  func.func @transform_1(%arg0: i32) -> (i32, i32) {
    %c0_i32 = arith.constant 0 : i32
    %c0_i32_0 = arith.constant 0 : i32
    %c0_i32_1 = arith.constant 0 : i32
    return %c0_i32, %c0_i32_0 : i32, i32
  }
  func.func @transform_2(%arg0: i32) -> (i32, i32) {
    %c0_i32 = arith.constant 0 : i32
    %c0_i32_0 = arith.constant 0 : i32
    return %arg0, %c0_i32 : i32, i32
  }
}

module attributes {stable_mosaic.version = 11 : i64} {
  func.func @_robot_avoidance_kernel(%arg0: i32, %arg1: memref<2x38xf32, #tpu.memory_space<vmem>>, %arg2: memref<1056x128xbf16, #tpu.memory_space<vmem>>, %arg3: memref<2x128xf32, #tpu.memory_space<vmem>>) attributes {dimension_semantics = [#tpu.dimension_semantics<parallel>], iteration_bounds = array<i64: 1>, scalar_prefetch = 0 : i64, scratch_operands = 0 : i64, tpu.core_type = #tpu.core_type<tc>, window_params = [{transform_indices = @transform_0, window_bounds = array<i64: 2, 38>}, {pipeline_mode = #tpu.pipeline_mode<synchronous>, transform_indices = @transform_1, window_bounds = array<i64: 1056, 128>}, {transform_indices = @transform_2, window_bounds = array<i64: 2, 128>}]} {
    %c0 = arith.constant 0 : index
    %c0_0 = arith.constant 0 : index
    %0 = vector.load %arg1[%c0, %c0_0] : memref<2x38xf32, #tpu.memory_space<vmem>>, vector<2x38xf32>
    %1 = arith.truncf %0 : vector<2x38xf32> to vector<2x38xbf16>
    %c0_1 = arith.constant 0 : index
    %c0_2 = arith.constant 0 : index
    %2 = vector.load %arg2[%c0_1, %c0_2] : memref<1056x128xbf16, #tpu.memory_space<vmem>>, vector<38x64xbf16>
    %cst = arith.constant dense<0.000000e+00> : vector<2x64xf32>
    %3 = tpu.matmul %1, %2, %cst {dimension_numbers = #tpu.dot_dimension_numbers<[1], [0], [0], [1], [0, 0, 1, 1], [], []>} : vector<2x38xbf16>, vector<38x64xbf16>, vector<2x64xf32> -> vector<2x64xf32>
    %c48 = arith.constant 48 : index
    %c0_3 = arith.constant 0 : index
    %4 = vector.load %arg2[%c48, %c0_3] : memref<1056x128xbf16, #tpu.memory_space<vmem>>, vector<1x64xbf16>
    %5 = arith.extf %4 : vector<1x64xbf16> to vector<1x64xf32>
    %6 = vector.broadcast %5 : vector<1x64xf32> to vector<2x64xf32>
    %7 = arith.addf %3, %6 : vector<2x64xf32>
    %cst_4 = arith.constant 0.000000e+00 : f32
    %8 = vector.broadcast %cst_4 : f32 to vector<2x64xf32>
    %9 = arith.maximumf %7, %8 : vector<2x64xf32>
    %10 = arith.truncf %9 : vector<2x64xf32> to vector<2x64xbf16>
    %c64 = arith.constant 64 : index
    %c0_5 = arith.constant 0 : index
    %11 = vector.load %arg2[%c64, %c0_5] : memref<1056x128xbf16, #tpu.memory_space<vmem>>, vector<64x32xbf16>
    %cst_6 = arith.constant dense<0.000000e+00> : vector<2x32xf32>
    %12 = tpu.matmul %10, %11, %cst_6 {dimension_numbers = #tpu.dot_dimension_numbers<[1], [0], [0], [1], [0, 0, 1, 1], [], []>} : vector<2x64xbf16>, vector<64x32xbf16>, vector<2x32xf32> -> vector<2x32xf32>
    %c128 = arith.constant 128 : index
    %c0_7 = arith.constant 0 : index
    %13 = vector.load %arg2[%c128, %c0_7] : memref<1056x128xbf16, #tpu.memory_space<vmem>>, vector<1x32xbf16>
    %14 = arith.extf %13 : vector<1x32xbf16> to vector<1x32xf32>
    %15 = vector.broadcast %14 : vector<1x32xf32> to vector<2x32xf32>
    %16 = arith.addf %12, %15 : vector<2x32xf32>
    %cst_8 = arith.constant 0.000000e+00 : f32
    %17 = vector.broadcast %cst_8 : f32 to vector<2x32xf32>
    %18 = arith.maximumf %16, %17 : vector<2x32xf32>
    %19 = arith.truncf %18 : vector<2x32xf32> to vector<2x32xbf16>
    %c144 = arith.constant 144 : index
    %c0_9 = arith.constant 0 : index
    %20 = vector.load %arg2[%c144, %c0_9] : memref<1056x128xbf16, #tpu.memory_space<vmem>>, vector<32x16xbf16>
    %cst_10 = arith.constant dense<0.000000e+00> : vector<2x16xf32>
    %21 = tpu.matmul %19, %20, %cst_10 {dimension_numbers = #tpu.dot_dimension_numbers<[1], [0], [0], [1], [0, 0, 1, 1], [], []>} : vector<2x32xbf16>, vector<32x16xbf16>, vector<2x16xf32> -> vector<2x16xf32>
    %c176 = arith.constant 176 : index
    %c0_11 = arith.constant 0 : index
    %22 = vector.load %arg2[%c176, %c0_11] : memref<1056x128xbf16, #tpu.memory_space<vmem>>, vector<1x16xbf16>
    %23 = arith.extf %22 : vector<1x16xbf16> to vector<1x16xf32>
    %24 = vector.broadcast %23 : vector<1x16xf32> to vector<2x16xf32>
    %25 = arith.addf %21, %24 : vector<2x16xf32>
    %cst_12 = arith.constant 0.000000e+00 : f32
    %26 = vector.broadcast %cst_12 : f32 to vector<2x16xf32>
    %27 = arith.maximumf %25, %26 : vector<2x16xf32>
    %c192 = arith.constant 192 : index
    %c0_13 = arith.constant 0 : index
    %28 = vector.load %arg2[%c192, %c0_13] : memref<1056x128xbf16, #tpu.memory_space<vmem>>, vector<38x128xbf16>
    %cst_14 = arith.constant dense<0.000000e+00> : vector<2x128xf32>
    %29 = tpu.matmul %1, %28, %cst_14 {dimension_numbers = #tpu.dot_dimension_numbers<[1], [0], [0], [1], [0, 0, 1, 1], [], []>} : vector<2x38xbf16>, vector<38x128xbf16>, vector<2x128xf32> -> vector<2x128xf32>
    %c240 = arith.constant 240 : index
    %c0_15 = arith.constant 0 : index
    %30 = vector.load %arg2[%c240, %c0_15] : memref<1056x128xbf16, #tpu.memory_space<vmem>>, vector<38x128xbf16>
    %cst_16 = arith.constant dense<0.000000e+00> : vector<2x128xf32>
    %31 = tpu.matmul %1, %30, %cst_16 {dimension_numbers = #tpu.dot_dimension_numbers<[1], [0], [0], [1], [0, 0, 1, 1], [], []>} : vector<2x38xbf16>, vector<38x128xbf16>, vector<2x128xf32> -> vector<2x128xf32>
    %c288 = arith.constant 288 : index
    %c0_17 = arith.constant 0 : index
    %32 = vector.load %arg2[%c288, %c0_17] : memref<1056x128xbf16, #tpu.memory_space<vmem>>, vector<38x128xbf16>
    %cst_18 = arith.constant dense<0.000000e+00> : vector<2x128xf32>
    %33 = tpu.matmul %1, %32, %cst_18 {dimension_numbers = #tpu.dot_dimension_numbers<[1], [0], [0], [1], [0, 0, 1, 1], [], []>} : vector<2x38xbf16>, vector<38x128xbf16>, vector<2x128xf32> -> vector<2x128xf32>
    %c336 = arith.constant 336 : index
    %c0_19 = arith.constant 0 : index
    %34 = vector.load %arg2[%c336, %c0_19] : memref<1056x128xbf16, #tpu.memory_space<vmem>>, vector<38x128xbf16>
    %cst_20 = arith.constant dense<0.000000e+00> : vector<2x128xf32>
    %35 = tpu.matmul %1, %34, %cst_20 {dimension_numbers = #tpu.dot_dimension_numbers<[1], [0], [0], [1], [0, 0, 1, 1], [], []>} : vector<2x38xbf16>, vector<38x128xbf16>, vector<2x128xf32> -> vector<2x128xf32>
    %c384 = arith.constant 384 : index
    %c0_21 = arith.constant 0 : index
    %36 = vector.load %arg2[%c384, %c0_21] : memref<1056x128xbf16, #tpu.memory_space<vmem>>, vector<38x128xbf16>
    %cst_22 = arith.constant dense<0.000000e+00> : vector<2x128xf32>
    %37 = tpu.matmul %1, %36, %cst_22 {dimension_numbers = #tpu.dot_dimension_numbers<[1], [0], [0], [1], [0, 0, 1, 1], [], []>} : vector<2x38xbf16>, vector<38x128xbf16>, vector<2x128xf32> -> vector<2x128xf32>
    %c432 = arith.constant 432 : index
    %c0_23 = arith.constant 0 : index
    %38 = vector.load %arg2[%c432, %c0_23] : memref<1056x128xbf16, #tpu.memory_space<vmem>>, vector<38x128xbf16>
    %cst_24 = arith.constant dense<0.000000e+00> : vector<2x128xf32>
    %39 = tpu.matmul %1, %38, %cst_24 {dimension_numbers = #tpu.dot_dimension_numbers<[1], [0], [0], [1], [0, 0, 1, 1], [], []>} : vector<2x38xbf16>, vector<38x128xbf16>, vector<2x128xf32> -> vector<2x128xf32>
    %c480 = arith.constant 480 : index
    %c0_25 = arith.constant 0 : index
    %40 = vector.load %arg2[%c480, %c0_25] : memref<1056x128xbf16, #tpu.memory_space<vmem>>, vector<38x128xbf16>
    %cst_26 = arith.constant dense<0.000000e+00> : vector<2x128xf32>
    %41 = tpu.matmul %1, %40, %cst_26 {dimension_numbers = #tpu.dot_dimension_numbers<[1], [0], [0], [1], [0, 0, 1, 1], [], []>} : vector<2x38xbf16>, vector<38x128xbf16>, vector<2x128xf32> -> vector<2x128xf32>
    %c528 = arith.constant 528 : index
    %c0_27 = arith.constant 0 : index
    %42 = vector.load %arg2[%c528, %c0_27] : memref<1056x128xbf16, #tpu.memory_space<vmem>>, vector<38x128xbf16>
    %cst_28 = arith.constant dense<0.000000e+00> : vector<2x128xf32>
    %43 = tpu.matmul %1, %42, %cst_28 {dimension_numbers = #tpu.dot_dimension_numbers<[1], [0], [0], [1], [0, 0, 1, 1], [], []>} : vector<2x38xbf16>, vector<38x128xbf16>, vector<2x128xf32> -> vector<2x128xf32>
    %44 = tpu.concatenate %29, %31, %33, %35, %37, %39, %41, %43 in 0 : vector<2x128xf32>, vector<2x128xf32>, vector<2x128xf32>, vector<2x128xf32>, vector<2x128xf32>, vector<2x128xf32>, vector<2x128xf32>, vector<2x128xf32> -> vector<16x128xf32>
    %c576 = arith.constant 576 : index
    %c0_29 = arith.constant 0 : index
    %45 = vector.load %arg2[%c576, %c0_29] : memref<1056x128xbf16, #tpu.memory_space<vmem>>, vector<1x128xbf16>
    %46 = arith.extf %45 : vector<1x128xbf16> to vector<1x128xf32>
    %47 = vector.extract_strided_slice %44 {offsets = [0, 0], sizes = [16, 64], strides = [1, 1]} : vector<16x128xf32> to vector<16x64xf32>
    %48 = vector.extract_strided_slice %46 {offsets = [0, 0], sizes = [1, 64], strides = [1, 1]} : vector<1x128xf32> to vector<1x64xf32>
    %49 = vector.broadcast %48 : vector<1x64xf32> to vector<16x64xf32>
    %50 = arith.addf %47, %49 : vector<16x64xf32>
    %cst_30 = arith.constant 0.000000e+00 : f32
    %51 = vector.broadcast %cst_30 : f32 to vector<16x64xf32>
    %52 = arith.maximumf %50, %51 : vector<16x64xf32>
    %53 = arith.truncf %52 : vector<16x64xf32> to vector<16x64xbf16>
    %c592 = arith.constant 592 : index
    %c0_31 = arith.constant 0 : index
    %54 = vector.load %arg2[%c592, %c0_31] : memref<1056x128xbf16, #tpu.memory_space<vmem>>, vector<64x32xbf16>
    %cst_32 = arith.constant dense<0.000000e+00> : vector<16x32xf32>
    %55 = tpu.matmul %53, %54, %cst_32 {dimension_numbers = #tpu.dot_dimension_numbers<[1], [0], [0], [1], [0, 0, 1, 1], [], []>} : vector<16x64xbf16>, vector<64x32xbf16>, vector<16x32xf32> -> vector<16x32xf32>
    %c656 = arith.constant 656 : index
    %c0_33 = arith.constant 0 : index
    %56 = vector.load %arg2[%c656, %c0_33] : memref<1056x128xbf16, #tpu.memory_space<vmem>>, vector<1x32xbf16>
    %57 = arith.extf %56 : vector<1x32xbf16> to vector<1x32xf32>
    %58 = vector.broadcast %57 : vector<1x32xf32> to vector<16x32xf32>
    %59 = arith.addf %55, %58 : vector<16x32xf32>
    %cst_34 = arith.constant 0.000000e+00 : f32
    %60 = vector.broadcast %cst_34 : f32 to vector<16x32xf32>
    %61 = arith.maximumf %59, %60 : vector<16x32xf32>
    %62 = arith.truncf %61 : vector<16x32xf32> to vector<16x32xbf16>
    %c672 = arith.constant 672 : index
    %c0_35 = arith.constant 0 : index
    %63 = vector.load %arg2[%c672, %c0_35] : memref<1056x128xbf16, #tpu.memory_space<vmem>>, vector<32x16xbf16>
    %cst_36 = arith.constant dense<0.000000e+00> : vector<16x16xf32>
    %64 = tpu.matmul %62, %63, %cst_36 {dimension_numbers = #tpu.dot_dimension_numbers<[1], [0], [0], [1], [0, 0, 1, 1], [], []>} : vector<16x32xbf16>, vector<32x16xbf16>, vector<16x16xf32> -> vector<16x16xf32>
    %c704 = arith.constant 704 : index
    %c0_37 = arith.constant 0 : index
    %65 = vector.load %arg2[%c704, %c0_37] : memref<1056x128xbf16, #tpu.memory_space<vmem>>, vector<1x16xbf16>
    %66 = arith.extf %65 : vector<1x16xbf16> to vector<1x16xf32>
    %67 = vector.broadcast %66 : vector<1x16xf32> to vector<16x16xf32>
    %68 = arith.addf %64, %67 : vector<16x16xf32>
    %cst_38 = arith.constant 0.000000e+00 : f32
    %69 = vector.broadcast %cst_38 : f32 to vector<16x16xf32>
    %70 = arith.maximumf %68, %69 : vector<16x16xf32>
    %cst_39 = arith.constant dense<0.000000e+00> : vector<16xf32>
    %71 = vector.multi_reduction <add>, %70, %cst_39 [1] : vector<16x16xf32> to vector<16xf32>
    %72 = vector.shape_cast %71 : vector<16xf32> to vector<16x1xf32>
    %73 = vector.extract_strided_slice %72 {offsets = [0, 0], sizes = [2, 1], strides = [1, 1]} : vector<16x1xf32> to vector<2x1xf32>
    %74 = vector.extract_strided_slice %72 {offsets = [2, 0], sizes = [2, 1], strides = [1, 1]} : vector<16x1xf32> to vector<2x1xf32>
    %75 = vector.extract_strided_slice %72 {offsets = [4, 0], sizes = [2, 1], strides = [1, 1]} : vector<16x1xf32> to vector<2x1xf32>
    %76 = vector.extract_strided_slice %72 {offsets = [6, 0], sizes = [2, 1], strides = [1, 1]} : vector<16x1xf32> to vector<2x1xf32>
    %77 = vector.extract_strided_slice %72 {offsets = [8, 0], sizes = [2, 1], strides = [1, 1]} : vector<16x1xf32> to vector<2x1xf32>
    %78 = vector.extract_strided_slice %72 {offsets = [10, 0], sizes = [2, 1], strides = [1, 1]} : vector<16x1xf32> to vector<2x1xf32>
    %79 = vector.extract_strided_slice %72 {offsets = [12, 0], sizes = [2, 1], strides = [1, 1]} : vector<16x1xf32> to vector<2x1xf32>
    %80 = vector.extract_strided_slice %72 {offsets = [14, 0], sizes = [2, 1], strides = [1, 1]} : vector<16x1xf32> to vector<2x1xf32>
    %81 = arith.maximumf %73, %74 : vector<2x1xf32>
    %82 = arith.maximumf %81, %75 : vector<2x1xf32>
    %83 = arith.maximumf %82, %76 : vector<2x1xf32>
    %84 = arith.maximumf %83, %77 : vector<2x1xf32>
    %85 = arith.maximumf %84, %78 : vector<2x1xf32>
    %86 = arith.maximumf %85, %79 : vector<2x1xf32>
    %87 = arith.maximumf %86, %80 : vector<2x1xf32>
    %88 = arith.subf %73, %87 : vector<2x1xf32>
    %89 = math.exp %88 : vector<2x1xf32>
    %90 = arith.subf %74, %87 : vector<2x1xf32>
    %91 = math.exp %90 : vector<2x1xf32>
    %92 = arith.subf %75, %87 : vector<2x1xf32>
    %93 = math.exp %92 : vector<2x1xf32>
    %94 = arith.subf %76, %87 : vector<2x1xf32>
    %95 = math.exp %94 : vector<2x1xf32>
    %96 = arith.subf %77, %87 : vector<2x1xf32>
    %97 = math.exp %96 : vector<2x1xf32>
    %98 = arith.subf %78, %87 : vector<2x1xf32>
    %99 = math.exp %98 : vector<2x1xf32>
    %100 = arith.subf %79, %87 : vector<2x1xf32>
    %101 = math.exp %100 : vector<2x1xf32>
    %102 = arith.subf %80, %87 : vector<2x1xf32>
    %103 = math.exp %102 : vector<2x1xf32>
    %104 = arith.addf %89, %91 : vector<2x1xf32>
    %105 = arith.addf %104, %93 : vector<2x1xf32>
    %106 = arith.addf %105, %95 : vector<2x1xf32>
    %107 = arith.addf %106, %97 : vector<2x1xf32>
    %108 = arith.addf %107, %99 : vector<2x1xf32>
    %109 = arith.addf %108, %101 : vector<2x1xf32>
    %110 = arith.addf %109, %103 : vector<2x1xf32>
    %111 = arith.divf %89, %110 : vector<2x1xf32>
    %112 = arith.divf %91, %110 : vector<2x1xf32>
    %113 = arith.divf %93, %110 : vector<2x1xf32>
    %114 = arith.divf %95, %110 : vector<2x1xf32>
    %115 = arith.divf %97, %110 : vector<2x1xf32>
    %116 = arith.divf %99, %110 : vector<2x1xf32>
    %117 = arith.divf %101, %110 : vector<2x1xf32>
    %118 = arith.divf %103, %110 : vector<2x1xf32>
    %119 = tpu.concatenate %111, %112, %113, %114, %115, %116, %117, %118 in 0 : vector<2x1xf32>, vector<2x1xf32>, vector<2x1xf32>, vector<2x1xf32>, vector<2x1xf32>, vector<2x1xf32>, vector<2x1xf32>, vector<2x1xf32> -> vector<16x1xf32>
    %120 = vector.extract_strided_slice %44 {offsets = [0, 64], sizes = [16, 64], strides = [1, 1]} : vector<16x128xf32> to vector<16x64xf32>
    %121 = vector.broadcast %119 : vector<16x1xf32> to vector<16x64xf32>
    %122 = arith.mulf %121, %120 : vector<16x64xf32>
    %123 = vector.extract_strided_slice %46 {offsets = [0, 64], sizes = [1, 64], strides = [1, 1]} : vector<1x128xf32> to vector<1x64xf32>
    %124 = vector.broadcast %123 : vector<1x64xf32> to vector<16x64xf32>
    %125 = arith.addf %122, %124 : vector<16x64xf32>
    %cst_40 = arith.constant 0.000000e+00 : f32
    %126 = vector.broadcast %cst_40 : f32 to vector<16x64xf32>
    %127 = arith.maximumf %125, %126 : vector<16x64xf32>
    %128 = arith.truncf %127 : vector<16x64xf32> to vector<16x64xbf16>
    %c720 = arith.constant 720 : index
    %c0_41 = arith.constant 0 : index
    %129 = vector.load %arg2[%c720, %c0_41] : memref<1056x128xbf16, #tpu.memory_space<vmem>>, vector<64x32xbf16>
    %cst_42 = arith.constant dense<0.000000e+00> : vector<16x32xf32>
    %130 = tpu.matmul %128, %129, %cst_42 {dimension_numbers = #tpu.dot_dimension_numbers<[1], [0], [0], [1], [0, 0, 1, 1], [], []>} : vector<16x64xbf16>, vector<64x32xbf16>, vector<16x32xf32> -> vector<16x32xf32>
    %c784 = arith.constant 784 : index
    %c0_43 = arith.constant 0 : index
    %131 = vector.load %arg2[%c784, %c0_43] : memref<1056x128xbf16, #tpu.memory_space<vmem>>, vector<1x32xbf16>
    %132 = arith.extf %131 : vector<1x32xbf16> to vector<1x32xf32>
    %133 = vector.broadcast %132 : vector<1x32xf32> to vector<16x32xf32>
    %134 = arith.addf %130, %133 : vector<16x32xf32>
    %cst_44 = arith.constant 0.000000e+00 : f32
    %135 = vector.broadcast %cst_44 : f32 to vector<16x32xf32>
    %136 = arith.maximumf %134, %135 : vector<16x32xf32>
    %137 = arith.truncf %136 : vector<16x32xf32> to vector<16x32xbf16>
    %c800 = arith.constant 800 : index
    %c0_45 = arith.constant 0 : index
    %138 = vector.load %arg2[%c800, %c0_45] : memref<1056x128xbf16, #tpu.memory_space<vmem>>, vector<32x16xbf16>
    %cst_46 = arith.constant dense<0.000000e+00> : vector<16x16xf32>
    %139 = tpu.matmul %137, %138, %cst_46 {dimension_numbers = #tpu.dot_dimension_numbers<[1], [0], [0], [1], [0, 0, 1, 1], [], []>} : vector<16x32xbf16>, vector<32x16xbf16>, vector<16x16xf32> -> vector<16x16xf32>
    %c832 = arith.constant 832 : index
    %c0_47 = arith.constant 0 : index
    %140 = vector.load %arg2[%c832, %c0_47] : memref<1056x128xbf16, #tpu.memory_space<vmem>>, vector<1x16xbf16>
    %141 = arith.extf %140 : vector<1x16xbf16> to vector<1x16xf32>
    %142 = vector.broadcast %141 : vector<1x16xf32> to vector<16x16xf32>
    %143 = arith.addf %139, %142 : vector<16x16xf32>
    %cst_48 = arith.constant 0.000000e+00 : f32
    %144 = vector.broadcast %cst_48 : f32 to vector<16x16xf32>
    %145 = arith.maximumf %143, %144 : vector<16x16xf32>
    %146 = vector.extract_strided_slice %145 {offsets = [0, 0], sizes = [2, 16], strides = [1, 1]} : vector<16x16xf32> to vector<2x16xf32>
    %147 = vector.extract_strided_slice %145 {offsets = [2, 0], sizes = [2, 16], strides = [1, 1]} : vector<16x16xf32> to vector<2x16xf32>
    %148 = arith.addf %146, %147 : vector<2x16xf32>
    %149 = vector.extract_strided_slice %145 {offsets = [4, 0], sizes = [2, 16], strides = [1, 1]} : vector<16x16xf32> to vector<2x16xf32>
    %150 = arith.addf %148, %149 : vector<2x16xf32>
    %151 = vector.extract_strided_slice %145 {offsets = [6, 0], sizes = [2, 16], strides = [1, 1]} : vector<16x16xf32> to vector<2x16xf32>
    %152 = arith.addf %150, %151 : vector<2x16xf32>
    %153 = vector.extract_strided_slice %145 {offsets = [8, 0], sizes = [2, 16], strides = [1, 1]} : vector<16x16xf32> to vector<2x16xf32>
    %154 = arith.addf %152, %153 : vector<2x16xf32>
    %155 = vector.extract_strided_slice %145 {offsets = [10, 0], sizes = [2, 16], strides = [1, 1]} : vector<16x16xf32> to vector<2x16xf32>
    %156 = arith.addf %154, %155 : vector<2x16xf32>
    %157 = vector.extract_strided_slice %145 {offsets = [12, 0], sizes = [2, 16], strides = [1, 1]} : vector<16x16xf32> to vector<2x16xf32>
    %158 = arith.addf %156, %157 : vector<2x16xf32>
    %159 = vector.extract_strided_slice %145 {offsets = [14, 0], sizes = [2, 16], strides = [1, 1]} : vector<16x16xf32> to vector<2x16xf32>
    %160 = arith.addf %158, %159 : vector<2x16xf32>
    %c848 = arith.constant 848 : index
    %c0_49 = arith.constant 0 : index
    %161 = vector.load %arg2[%c848, %c0_49] : memref<1056x128xbf16, #tpu.memory_space<vmem>>, vector<16x64xbf16>
    %c864 = arith.constant 864 : index
    %c0_50 = arith.constant 0 : index
    %162 = vector.load %arg2[%c864, %c0_50] : memref<1056x128xbf16, #tpu.memory_space<vmem>>, vector<16x64xbf16>
    %163 = arith.truncf %27 : vector<2x16xf32> to vector<2x16xbf16>
    %cst_51 = arith.constant dense<0.000000e+00> : vector<2x64xf32>
    %164 = tpu.matmul %163, %161, %cst_51 {dimension_numbers = #tpu.dot_dimension_numbers<[1], [0], [0], [1], [0, 0, 1, 1], [], []>} : vector<2x16xbf16>, vector<16x64xbf16>, vector<2x64xf32> -> vector<2x64xf32>
    %165 = arith.truncf %160 : vector<2x16xf32> to vector<2x16xbf16>
    %cst_52 = arith.constant dense<0.000000e+00> : vector<2x64xf32>
    %166 = tpu.matmul %165, %162, %cst_52 {dimension_numbers = #tpu.dot_dimension_numbers<[1], [0], [0], [1], [0, 0, 1, 1], [], []>} : vector<2x16xbf16>, vector<16x64xbf16>, vector<2x64xf32> -> vector<2x64xf32>
    %167 = arith.addf %164, %166 : vector<2x64xf32>
    %c880 = arith.constant 880 : index
    %c0_53 = arith.constant 0 : index
    %168 = vector.load %arg2[%c880, %c0_53] : memref<1056x128xbf16, #tpu.memory_space<vmem>>, vector<1x64xbf16>
    %169 = arith.extf %168 : vector<1x64xbf16> to vector<1x64xf32>
    %170 = vector.broadcast %169 : vector<1x64xf32> to vector<2x64xf32>
    %171 = arith.addf %167, %170 : vector<2x64xf32>
    %cst_54 = arith.constant 0.000000e+00 : f32
    %172 = vector.broadcast %cst_54 : f32 to vector<2x64xf32>
    %173 = arith.maximumf %171, %172 : vector<2x64xf32>
    %174 = arith.truncf %173 : vector<2x64xf32> to vector<2x64xbf16>
    %c896 = arith.constant 896 : index
    %c0_55 = arith.constant 0 : index
    %175 = vector.load %arg2[%c896, %c0_55] : memref<1056x128xbf16, #tpu.memory_space<vmem>>, vector<64x32xbf16>
    %cst_56 = arith.constant dense<0.000000e+00> : vector<2x32xf32>
    %176 = tpu.matmul %174, %175, %cst_56 {dimension_numbers = #tpu.dot_dimension_numbers<[1], [0], [0], [1], [0, 0, 1, 1], [], []>} : vector<2x64xbf16>, vector<64x32xbf16>, vector<2x32xf32> -> vector<2x32xf32>
    %c960 = arith.constant 960 : index
    %c0_57 = arith.constant 0 : index
    %177 = vector.load %arg2[%c960, %c0_57] : memref<1056x128xbf16, #tpu.memory_space<vmem>>, vector<1x32xbf16>
    %178 = arith.extf %177 : vector<1x32xbf16> to vector<1x32xf32>
    %179 = vector.broadcast %178 : vector<1x32xf32> to vector<2x32xf32>
    %180 = arith.addf %176, %179 : vector<2x32xf32>
    %cst_58 = arith.constant 0.000000e+00 : f32
    %181 = vector.broadcast %cst_58 : f32 to vector<2x32xf32>
    %182 = arith.maximumf %180, %181 : vector<2x32xf32>
    %183 = arith.truncf %182 : vector<2x32xf32> to vector<2x32xbf16>
    %c976 = arith.constant 976 : index
    %c0_59 = arith.constant 0 : index
    %184 = vector.load %arg2[%c976, %c0_59] : memref<1056x128xbf16, #tpu.memory_space<vmem>>, vector<32x16xbf16>
    %cst_60 = arith.constant dense<0.000000e+00> : vector<2x16xf32>
    %185 = tpu.matmul %183, %184, %cst_60 {dimension_numbers = #tpu.dot_dimension_numbers<[1], [0], [0], [1], [0, 0, 1, 1], [], []>} : vector<2x32xbf16>, vector<32x16xbf16>, vector<2x16xf32> -> vector<2x16xf32>
    %c1008 = arith.constant 1008 : index
    %c0_61 = arith.constant 0 : index
    %186 = vector.load %arg2[%c1008, %c0_61] : memref<1056x128xbf16, #tpu.memory_space<vmem>>, vector<1x16xbf16>
    %187 = arith.extf %186 : vector<1x16xbf16> to vector<1x16xf32>
    %188 = vector.broadcast %187 : vector<1x16xf32> to vector<2x16xf32>
    %189 = arith.addf %185, %188 : vector<2x16xf32>
    %cst_62 = arith.constant 0.000000e+00 : f32
    %190 = vector.broadcast %cst_62 : f32 to vector<2x16xf32>
    %191 = arith.maximumf %189, %190 : vector<2x16xf32>
    %192 = arith.truncf %191 : vector<2x16xf32> to vector<2x16xbf16>
    %c1024 = arith.constant 1024 : index
    %c0_63 = arith.constant 0 : index
    %193 = vector.load %arg2[%c1024, %c0_63] : memref<1056x128xbf16, #tpu.memory_space<vmem>>, vector<16x128xbf16>
    %cst_64 = arith.constant dense<0.000000e+00> : vector<2x128xf32>
    %194 = tpu.matmul %192, %193, %cst_64 {dimension_numbers = #tpu.dot_dimension_numbers<[1], [0], [0], [1], [0, 0, 1, 1], [], []>} : vector<2x16xbf16>, vector<16x128xbf16>, vector<2x128xf32> -> vector<2x128xf32>
    %c1040 = arith.constant 1040 : index
    %c0_65 = arith.constant 0 : index
    %195 = vector.load %arg2[%c1040, %c0_65] : memref<1056x128xbf16, #tpu.memory_space<vmem>>, vector<1x128xbf16>
    %196 = arith.extf %195 : vector<1x128xbf16> to vector<1x128xf32>
    %197 = vector.broadcast %196 : vector<1x128xf32> to vector<2x128xf32>
    %198 = arith.addf %194, %197 : vector<2x128xf32>
    %c0_66 = arith.constant 0 : index
    %c0_67 = arith.constant 0 : index
    %199 = vector.load %arg3[%c0_66, %c0_67] : memref<2x128xf32, #tpu.memory_space<vmem>>, vector<2x128xf32>
    tpu.vector_store %arg3[%c0_66, %c0_67], %198 {strides = array<i32>} : memref<2x128xf32, #tpu.memory_space<vmem>>, vector<2x128xf32>,
    return
  }
  func.func @transform_0(%arg0: i32) -> (i32, i32) {
    %c0_i32 = arith.constant 0 : i32
    %c0_i32_0 = arith.constant 0 : i32
    return %arg0, %c0_i32 : i32, i32
  }
  func.func @transform_1(%arg0: i32) -> (i32, i32) {
    %c0_i32 = arith.constant 0 : i32
    %c0_i32_0 = arith.constant 0 : i32
    %c0_i32_1 = arith.constant 0 : i32
    return %c0_i32, %c0_i32_0 : i32, i32
  }
  func.func @transform_2(%arg0: i32) -> (i32, i32) {
    %c0_i32 = arith.constant 0 : i32
    %c0_i32_0 = arith.constant 0 : i32
    return %arg0, %c0_i32 : i32, i32
  }
}

</mosaic_0001>

<bundles_post_ra>
// kernel: tpu_custom_call.1
= control target key start
LH: loop header
LB: loop body
LE: loop exit
PB: predicated region body
PF: predicated region fallthrough
CT: control target
= control target key end

     0   :  { %7 = vsyncpa [#allocation3], 0  ;;  %s2347_s0 = inlined_call_operand.hbm [shape: f32[2,38], index: 0, kind: input, shape index: {}]   ;;  %s2348_s1 = inlined_call_operand.hbm [shape: bf16[1056,128], index: 1, kind: input, shape index: {}]   ;;  %s2349_s2 = inlined_call_operand.hbm [shape: f32[2,128], index: 2, kind: output, shape index: {}]  }
   0x1   :  { %8 = vsyncpa [#allocation6], 0 }
   0x2   :  { %9 = vsyncpa [#allocation4], 0  ;;  %s2099_s9 = smov [#allocation2]   ;;  %s2100_s11 = smov [#allocation5]  }
   0x3   :  { %s16_s10 = sshll.u32 %s2099_s9, 4  ;;  %s25_s12 = sshll.u32 %s2100_s11, 4  ;;  %s17_s10 = int_to_ptr.vmem [resolvable:$true] %s16_s10  ;;  %s2122_s12 = int_to_ptr.vmem [resolvable:$true] %s25_s12 }
   0x4   :  { %s2027_s15 = scalar_lea.hbm %s2347_s0, 32 }
   0x5   :  { %p2028_p0 = scmp.ne.s32.totalorder %s2347_s0, %s2027_s15  ;;  %p2031_p1 = scmp.lt.u32.totalorder %s2027_s15, %s2347_s0 }
   0x7   :  { %p2033_p2 = pnand %p2031_p1, %p2028_p0 }
   0x9   :  { %2036 = shalt.err (!%p2033_p2)
}
   0xa   :  { %s2037_s20 = scalar_lea.vmem %s17_s10, 32  ;;  %p2042_p4 = scmp.lt.s32.totalorder %s17_s10, %s17_s10 }
   0xb   :  { %p2038_p3 = scmp.ne.s32.totalorder %s17_s10, %s2037_s20  ;;  %p2043_p5 = scmp.lt.s32.totalorder %s2037_s20, %s2037_s20 }
   0xd   :  { %p2044_p6 = por %p2043_p5, %p2042_p4 }
   0xf   :  { %p2045_p7 = pnand %p2044_p6, %p2038_p3 }
  0x11   :  { %2048 = shalt.err (!%p2045_p7)
}
  0x12   :  { %19 = dma.hbm_to_vmem [thread:$0]  %s2347_s0, 32, %s17_s10, [#allocation3]  }
  0x13   :  { %s2049_s25 = scalar_lea.hbm %s2348_s1, 8448 }
  0x14   :  { %p2050_p8 = scmp.ne.s32.totalorder %s2348_s1, %s2049_s25  ;;  %p2053_p9 = scmp.lt.u32.totalorder %s2049_s25, %s2348_s1 }
  0x16   :  { %p2055_p10 = pnand %p2053_p9, %p2050_p8 }
  0x18   :  { %2058 = shalt.err (!%p2055_p10)
}
  0x19   :  { %s2059_s30 = scalar_lea.vmem %s2122_s12, 8448  ;;  %p2064_p12 = scmp.lt.s32.totalorder %s2122_s12, %s2122_s12 }
  0x1a   :  { %p2060_p11 = scmp.ne.s32.totalorder %s2122_s12, %s2059_s30  ;;  %p2065_p13 = scmp.lt.s32.totalorder %s2059_s30, %s2059_s30 }
  0x1c   :  { %p2066_p0 = por %p2065_p13, %p2064_p12 }
  0x1e   :  { %p2067_p1 = pnand %p2066_p0, %p2060_p11 }
  0x20   :  { %2070 = shalt.err (!%p2067_p1)
}
  0x21   :  { %s2101_s0 = smov 64   ;;  %s2102_s3 = smov 4  }
  0x22   :  { %31 = dma.hbm_to_vmem [thread:$0]  %s2348_s1, 8448, %s2122_s12, [#allocation6], %s2101_s0, %s2101_s0, %s2102_s3  }
  0x23   :  { %2093 = dma.done.wait [#allocation3], 32  }
  0x24   :  { %2094 = vsyncadd [#allocation3], 4294967264 }
  0x25   :  { %2095 = dma.done.wait [#allocation6], 8448  }
  0x26   :  { %2096 = vsyncadd [#allocation6], 4294958848  ;;  %v2103_v0 = vmov 0.0   ;;  %vm2104_vm0 = vmmov 0   ;;  %v1949_v1 = vld [vmem:[#allocation5] sm:$0xff]   ;;  %v1950_v2 = vld [vmem:[#allocation5 + $0x8] sm:$0xff]   ;;  %v48_v12 = vlaneseq }
  0x27   :  { %1751 = vmatprep.subr.bf16.mxu0 %v2103_v0  ;;  %1757 = vmatprep.mubr.msk.bf16.mxu0 %vm2104_vm0, %v2103_v0  ;;  %vm71_vm1 = vcmask 1042432   ;;  %v1951_v3 = vld [vmem:[#allocation5 + $0x10] ss:$0 sps:$4 sm:$0x77]   ;;  %v1952_v4 = vld [vmem:[#allocation5 + $0x20] sm:$0xff]   ;;  %v1953_v6 = vld [vmem:[#allocation5 + $0x28] sm:$0xff]  }
  0x28   :  { %1761 = vmatprep.subr.bf16.mxu1 %v2103_v0  ;;  %1769 = vmatprep.mubr.msk.bf16.mxu1 %vm2104_vm0, %v2103_v0  ;;  %v39_v5 = vld [vmem:[#allocation2] sm:$0x3]  ;;  %v73_v7 = vsel %vm71_vm1, %v1951_v3, 0  ;;  %vm67_vm2 = vcmask 310272   ;;  %v1954_v9 = vld [vmem:[#allocation5 + $0x30] sm:$0xff]   ;;  %v1957_v11 = vld [vmem:[#allocation5 + $0x48] sm:$0xff]  }
  0x29   :  { %1752 = vmatpush3.bf16.msra.mxu0 %v1949_v1  ;;  %1762 = vmatpush3.bf16.msra.mxu1 %v1952_v4  ;;  %v2165_v8 = vpack.c.bf16 %v39_v5, %v39_v5  ;;  %v1955_v10 = vld [vmem:[#allocation5 + $0x38] sm:$0xff]   ;;  %v49_v13 = vshrl.u32 %v48_v12, 7  ;;  %vm155_vm3 = vcmask 523264   ;;  %v1956_v24 = vld [vmem:[#allocation5 + $0x60] sm:$0xff]   ;;  %v1958_v26 = vld [vmem:[#allocation5 + $0x68] sm:$0xff]   ;;  %vm223_vm4 = vcmask 261120  }
  0x2a   :  { %1753 = vmatprep.subr.bf16.mxu0 %v2103_v0  ;;  %1763 = vmatprep.subr.bf16.mxu1 %v2103_v0  ;;  %v46_v14 = vld [vmem:[#allocation5 + $0x18] sm:$0x1]  ;;  %v1959_v27 = vld [vmem:[#allocation5 + $0x50] sm:$0xff]   ;;  %v1966_v32 = vld [vmem:[#allocation5 + $0xa0] ss:$0 sps:$4 sm:$0x77]  }
  0x2b   :  { %v47_v15 = vunpack.c.l.bf16 %v46_v14  ;;  %v2176_v16 = vsub.s32 0, %v49_v13  ;;  %v1960_v28 = vld [vmem:[#allocation5 + $0x70] ss:$0 sps:$4 sm:$0x77]   ;;  %v1964_v31 = vld [vmem:[#allocation5 + $0x98] sm:$0xff]   ;;  %v415_v33 = vsel %vm71_vm1, %v1966_v32, 0 }
  0x2c   :  { %v289_v29 = vsel %vm71_vm1, %v1960_v28, 0  ;;  %v1962_v30 = vld [vmem:[#allocation5 + $0x90] sm:$0xff]   ;;  %v1968_v34 = vld [vmem:[#allocation5 + $0xc0] sm:$0xff]   ;;  %v1970_v35 = vld [vmem:[#allocation5 + $0xc8] sm:$0xff]   ;;  %vm790_vm5 = vcmask 1041408   ;;  %vm792_vm6 = vcmask 1043456  }
  0x2d   :  { %1754 = vmatpush3.bf16.msra.mxu0 %v1950_v2  ;;  %1764 = vmatpush3.bf16.msra.mxu1 %v1953_v6  ;;  %v51_v17 = vrot.slane %v47_v15, %v2176_v16  ;;  %v1972_v36 = vld [vmem:[#allocation5 + $0xd0] ss:$0 sps:$4 sm:$0x77]   ;;  %v1976_v39 = vld [vmem:[#allocation5 + $0xf8] sm:$0xff]   ;;  %v125_v42 = vld [vmem:[#allocation5 + $0x40] sm:$0x1] }
  0x2e   :  { %1755 = vmatprep.subr.bf16.mxu0 %v2103_v0  ;;  %1765 = vmatprep.subr.bf16.mxu1 %v2103_v0  ;;  %v541_v37 = vsel %vm71_vm1, %v1972_v36, 0  ;;  %v1974_v38 = vld [vmem:[#allocation5 + $0xf0] sm:$0xff]   ;;  %v1978_v40 = vld [vmem:[#allocation5 + $0x100] ss:$0 sps:$4 sm:$0x77]   ;;  %v126_v43 = vunpack.c.l.bf16 %v125_v42  ;;  %v1961_v51 = vld [vmem:[#allocation5 + $0x78] sm:$0xff]  }
  0x2f   :  { %v667_v41 = vsel %vm71_vm1, %v1978_v40, 0  ;;  %v1963_v53 = vld [vmem:[#allocation5 + $0x80] sm:$0xff]   ;;  %v1965_v54 = vld [vmem:[#allocation5 + $0x88] ss:$0 sps:$4 sm:$0x77]   ;;  %v1969_v57 = vld [vmem:[#allocation5 + $0xb0] sm:$0xff]  }
  0x30   :  { %v130_v44 = vrot.slane %v126_v43, %v2176_v16  ;;  %v352_v55 = vsel %vm71_vm1, %v1965_v54, 0  ;;  %v1967_v56 = vld [vmem:[#allocation5 + $0xa8] sm:$0xff]   ;;  %v1971_v58 = vld [vmem:[#allocation5 + $0xb8] ss:$0 sps:$4 sm:$0x77]   ;;  %v1975_v61 = vld [vmem:[#allocation5 + $0xe0] sm:$0xff]  }
  0x31   :  { %1756 = vmatpush3.bf16.msra.mxu0 %v73_v7  ;;  %1766 = vmatpush3.bf16.msra.mxu1 %v1954_v9  ;;  %v478_v59 = vsel %vm71_vm1, %v1971_v58, 0  ;;  %v1973_v60 = vld [vmem:[#allocation5 + $0xd8] sm:$0xff]   ;;  %v1977_v62 = vld [vmem:[#allocation5 + $0xe8] ss:$0 sps:$4 sm:$0x77]   ;;  %v1980_v2 = vld [vmem:[#allocation5 + $0x110] sm:$0xff]  }
  0x32   :  { %1773 = vmatprep.subr.bf16.mxu0 %v2103_v0  ;;  %1767 = vmatprep.subr.bf16.mxu1 %v2103_v0  ;;  %v604_v63 = vsel %vm71_vm1, %v1977_v62, 0  ;;  %v1979_v1 = vld [vmem:[#allocation5 + $0x108] sm:$0xff]   ;;  %v1981_v3 = vld [vmem:[#allocation5 + $0x118] ss:$0 sps:$4 sm:$0x77]   ;;  %vm794_vm7 = vcmask 1045504  }
  0x33   :  { %v730_v4 = vsel %vm71_vm1, %v1981_v3, 0  ;;  %v1986_v3 = vld [vmem:[#allocation5 + $0x150] sm:$0xff]   ;;  %vm963_vm8 = vcmask 130048   ;;  %s2106_s1 = smov [#allocation7]  }
  0x34   :  { %1758 = vmatmul.mubr.msk.bf16.vlgmr.msra.gmra.mrb[0].mxu0 %vm67_vm2, %v2165_v8  ;;  %s1593_s6 = sshll.u32 %s2106_s1, 4  ;;  %s1594_s6 = int_to_ptr.vmem [resolvable:$true] %s1593_s6 }
  0x35   :  { %1777 = vmatprep.mubr.msk.bf16.mxu0 %vm2104_vm0, %v2103_v0  ;;  %1768 = vmatpush3.bf16.msra.mxu1 %v1955_v10  ;;  %s2071_s7 = scalar_lea.vmem %s1594_s6, 32  ;;  %p2076_p3 = scmp.lt.s32.totalorder %s1594_s6, %s1594_s6 }
  0x36   :  { %1781 = vmatprep.subr.bf16.mxu1 %v2103_v0  ;;  %1774 = vmatpush3.bf16.msra.mxu0 %v1957_v11  ;;  %p2072_p2 = scmp.ne.s32.totalorder %s1594_s6, %s2071_s7  ;;  %p2077_p4 = scmp.lt.s32.totalorder %s2071_s7, %s2071_s7 }
  0x37   :  { %1775 = vmatprep.subr.bf16.mxu0 %v2103_v0 }
  0x38   :  { %p2078_p5 = por %p2077_p4, %p2076_p3 }
  0x3a   :  { %1776 = vmatpush3.bf16.msra.mxu0 %v1959_v27  ;;  %p2079_p6 = pnand %p2078_p5, %p2072_p2 }
  0x3b   :  { %1791 = vmatprep.subr.bf16.mxu0 %v2103_v0 }
 0x107   :  { %v109_v18 = vpop.f32.mrb[0].mxu0 }
 0x108   :  { %v110_v19 = vadd.f32 %v109_v18, %v51_v17  ;;  %v1759_v20 = vpop.f32.mrb[1].mxu0 }
 0x109   :  { %v112_v21 = vpop.f32.mrb[2].mxu0 }
 0x10a   :  { %v115_v22 = vmax.f32 %v110_v19, 0.0  ;;  %v1760_v23 = vpop.f32.mrb[3].mxu0 }
 0x10b   :  { %v1983_v23 = vld [vmem:[#allocation5 + $0x130] sm:$0xff]  }
 0x10c   :  { %v116_v25 = vpack.c.bf16 %v115_v22, %v115_v22  ;;  %v1982_v22 = vld [vmem:[#allocation5 + $0x128] sm:$0xff]  }
 0x10e   :  { %1770 = vmatmul.mubr.msk.bf16.vlgmr.msra.gmra.mrb[0].mxu1 %vm155_vm3, %v116_v25  ;;  %v1985_v25 = vld [vmem:[#allocation5 + $0x140] sm:$0xff]  }
 0x10f   :  { %1782 = vmatpush3.bf16.msra.mxu1 %v1956_v24  ;;  %1787 = vmatprep.mubr.msk.bf16.mxu1 %vm2104_vm0, %v2103_v0  ;;  %v1984_v24 = vld [vmem:[#allocation5 + $0x138] sm:$0xff]  }
 0x110   :  { %1783 = vmatprep.subr.bf16.mxu1 %v2103_v0 }
 0x113   :  { %1784 = vmatpush3.bf16.msra.mxu1 %v1958_v26 }
 0x114   :  { %1785 = vmatprep.subr.bf16.mxu1 %v2103_v0 }
 0x117   :  { %1786 = vmatpush3.bf16.msra.mxu1 %v289_v29 }
 0x118   :  { %1801 = vmatprep.subr.bf16.mxu1 %v2103_v0 }
 0x11a   :  { %1788 = vmatmul.mubr.msk.bf16.vlgmr.msra.gmra.mrb[4].mxu1 %vm67_vm2, %v2165_v8 }
 0x11b   :  { %1807 = vmatprep.mubr.msk.bf16.mxu1 %vm2104_vm0, %v2103_v0  ;;  %1802 = vmatpush3.bf16.msra.mxu1 %v1962_v30 }
 0x11c   :  { %1803 = vmatprep.subr.bf16.mxu1 %v2103_v0 }
 0x11f   :  { %1804 = vmatpush3.bf16.msra.mxu1 %v1964_v31 }
 0x120   :  { %1805 = vmatprep.subr.bf16.mxu1 %v2103_v0 }
 0x123   :  { %1806 = vmatpush3.bf16.msra.mxu1 %v415_v33 }
 0x124   :  { %1821 = vmatprep.subr.bf16.mxu1 %v2103_v0 }
 0x126   :  { %1808 = vmatmul.mubr.msk.bf16.vlgmr.msra.gmra.mrb[8].mxu1 %vm67_vm2, %v2165_v8 }
 0x127   :  { %1822 = vmatpush3.bf16.msra.mxu1 %v1968_v34  ;;  %1827 = vmatprep.mubr.msk.bf16.mxu1 %vm2104_vm0, %v2103_v0 }
 0x128   :  { %1823 = vmatprep.subr.bf16.mxu1 %v2103_v0 }
 0x12b   :  { %1824 = vmatpush3.bf16.msra.mxu1 %v1970_v35 }
 0x12c   :  { %1825 = vmatprep.subr.bf16.mxu1 %v2103_v0 }
 0x12f   :  { %1826 = vmatpush3.bf16.msra.mxu1 %v541_v37 }
 0x130   :  { %1841 = vmatprep.subr.bf16.mxu1 %v2103_v0 }
 0x132   :  { %1828 = vmatmul.mubr.msk.bf16.vlgmr.msra.gmra.mrb[12].mxu1 %vm67_vm2, %v2165_v8 }
 0x133   :  { %1842 = vmatpush3.bf16.msra.mxu1 %v1974_v38  ;;  %1847 = vmatprep.mubr.msk.bf16.mxu1 %vm2104_vm0, %v2103_v0 }
 0x134   :  { %1843 = vmatprep.subr.bf16.mxu1 %v2103_v0 }
 0x137   :  { %1844 = vmatpush3.bf16.msra.mxu1 %v1976_v39 }
 0x138   :  { %1845 = vmatprep.subr.bf16.mxu1 %v2103_v0 }
 0x13b   :  { %1846 = vmatpush3.bf16.msra.mxu1 %v667_v41 }
 0x13c   :  { %1861 = vmatprep.subr.bf16.mxu1 %v2103_v0 }
 0x13e   :  { %1848 = vmatmul.mubr.msk.bf16.vlgmr.msra.gmra.mrb[16].mxu1 %vm67_vm2, %v2165_v8 }
 0x13f   :  { %1869 = vmatprep.mubr.msk.bf16.mxu1 %vm2104_vm0, %v2103_v0  ;;  %1862 = vmatpush3.bf16.msra.mxu1 %v1982_v22 }
 0x140   :  { %1863 = vmatprep.subr.bf16.mxu1 %v2103_v0 }
 0x143   :  { %1864 = vmatpush3.bf16.msra.mxu1 %v1983_v23 }
 0x144   :  { %1865 = vmatprep.subr.bf16.mxu1 %v2103_v0 }
 0x147   :  { %1866 = vmatpush3.bf16.msra.mxu1 %v1984_v24 }
 0x148   :  { %1867 = vmatprep.subr.bf16.mxu1 %v2103_v0 }
 0x14b   :  { %1868 = vmatpush3.bf16.msra.mxu1 %v1985_v25 }
 0x14c   :  { %1893 = vmatprep.subr.bf16.mxu1 %v2103_v0 }
 0x1e1   :  { %v193_v45 = vpop.f32.mrb[0].mxu1 }
 0x1e2   :  { %v194_v46 = vadd.f32 %v193_v45, %v130_v44  ;;  %v1771_v47 = vpop.f32.mrb[1].mxu1 }
 0x1e3   :  { %v196_v48 = vpop.f32.mrb[2].mxu1 }
 0x1e4   :  { %v199_v49 = vmax.f32 %v194_v46, 0.0  ;;  %v1772_v50 = vpop.f32.mrb[3].mxu1 }
 0x1e6   :  { %v200_v52 = vpack.c.bf16 %v199_v49, %v199_v49  ;;  %v799_v49 = vld [vmem:[#allocation5 + $0x120] sm:$0x1] }
 0x1e8   :  { %1778 = vmatmul.mubr.msk.bf16.vlgmr.msra.gmra.mrb[4].mxu0 %vm223_vm4, %v200_v52 }
 0x1e9   :  { %1792 = vmatpush3.bf16.msra.mxu0 %v1961_v51  ;;  %1797 = vmatprep.mubr.msk.bf16.mxu0 %vm2104_vm0, %v2103_v0 }
 0x1ea   :  { %1793 = vmatprep.subr.bf16.mxu0 %v2103_v0 }
 0x1ed   :  { %1794 = vmatpush3.bf16.msra.mxu0 %v1963_v53  ;;  %v325_v5 = vpop.f32.mrb[4].mxu1  ;;  %v800_v53 = vunpack.c.l.bf16 %v799_v49 }
 0x1ee   :  { %1795 = vmatprep.subr.bf16.mxu0 %v2103_v0  ;;  %v1789_v6 = vpop.f32.mrb[5].mxu1 }
 0x1ef   :  { %v328_v7 = vpop.f32.mrb[6].mxu1  ;;  %v2265_v54 = vrot.slane %v800_v53, %v2176_v16 }
 0x1f0   :  { %v1790_v9 = vpop.f32.mrb[7].mxu1 }
 0x1f1   :  { %1796 = vmatpush3.bf16.msra.mxu0 %v352_v55 }
 0x1f2   :  { %1811 = vmatprep.subr.bf16.mxu0 %v2103_v0 }
 0x1f4   :  { %1798 = vmatmul.mubr.msk.bf16.vlgmr.msra.gmra.mrb[8].mxu0 %vm67_vm2, %v2165_v8 }
 0x1f5   :  { %1812 = vmatpush3.bf16.msra.mxu0 %v1967_v56  ;;  %1817 = vmatprep.mubr.msk.bf16.mxu0 %vm2104_vm0, %v2103_v0 }
 0x1f6   :  { %1813 = vmatprep.subr.bf16.mxu0 %v2103_v0 }
 0x1f9   :  { %1814 = vmatpush3.bf16.msra.mxu0 %v1969_v57  ;;  %v451_v10 = vpop.f32.mrb[8].mxu1 }
 0x1fa   :  { %1815 = vmatprep.subr.bf16.mxu0 %v2103_v0  ;;  %v1809_v11 = vpop.f32.mrb[9].mxu1  ;;  %v776_v31 = vrot.slane %v451_v10, 4 }
 0x1fb   :  { %v454_v12 = vpop.f32.mrb[10].mxu1 }
 0x1fc   :  { %v1810_v13 = vpop.f32.mrb[11].mxu1 }
 0x1fd   :  { %1816 = vmatpush3.bf16.msra.mxu0 %v478_v59 }
 0x1fe   :  { %1831 = vmatprep.subr.bf16.mxu0 %v2103_v0 }
 0x200   :  { %1818 = vmatmul.mubr.msk.bf16.vlgmr.msra.gmra.mrb[12].mxu0 %vm67_vm2, %v2165_v8 }
 0x201   :  { %1832 = vmatpush3.bf16.msra.mxu0 %v1973_v60  ;;  %1837 = vmatprep.mubr.msk.bf16.mxu0 %vm2104_vm0, %v2103_v0 }
 0x202   :  { %1833 = vmatprep.subr.bf16.mxu0 %v2103_v0 }
 0x205   :  { %1834 = vmatpush3.bf16.msra.mxu0 %v1975_v61  ;;  %v577_v14 = vpop.f32.mrb[12].mxu1 }
 0x206   :  { %1835 = vmatprep.subr.bf16.mxu0 %v2103_v0  ;;  %v1829_v15 = vpop.f32.mrb[13].mxu1 }
 0x207   :  { %v580_v17 = vpop.f32.mrb[14].mxu1 }
 0x208   :  { %v1830_v18 = vpop.f32.mrb[15].mxu1 }
 0x209   :  { %1836 = vmatpush3.bf16.msra.mxu0 %v604_v63 }
 0x20a   :  { %1851 = vmatprep.subr.bf16.mxu0 %v2103_v0 }
 0x20c   :  { %1838 = vmatmul.mubr.msk.bf16.vlgmr.msra.gmra.mrb[16].mxu0 %vm67_vm2, %v2165_v8 }
 0x20d   :  { %1852 = vmatpush3.bf16.msra.mxu0 %v1979_v1  ;;  %1857 = vmatprep.mubr.msk.bf16.mxu0 %vm2104_vm0, %v2103_v0 }
 0x20e   :  { %1853 = vmatprep.subr.bf16.mxu0 %v2103_v0 }
 0x211   :  { %1854 = vmatpush3.bf16.msra.mxu0 %v1980_v2  ;;  %v703_v19 = vpop.f32.mrb[16].mxu1 }
 0x212   :  { %1855 = vmatprep.subr.bf16.mxu0 %v2103_v0  ;;  %v1849_v20 = vpop.f32.mrb[17].mxu1  ;;  %v785_v45 = vrot.slane %v703_v19, 4  ;;  %v899_v19 = vld [vmem:[#allocation5 + $0x160] sm:$0x1] }
 0x213   :  { %v706_v21 = vpop.f32.mrb[18].mxu1  ;;  %v900_v20 = vunpack.c.l.bf16 %v899_v19 }
 0x215   :  { %1856 = vmatpush3.bf16.msra.mxu0 %v730_v4  ;;  %v1987_v4 = vld [vmem:[#allocation5 + $0x158] sm:$0xff]   ;;  %v904_v21 = vrot.slane %v900_v20, %v2176_v16 }
 0x216   :  { %1873 = vmatprep.subr.bf16.mxu0 %v2103_v0 }
 0x218   :  { %1858 = vmatmul.mubr.msk.bf16.vlgmr.msra.gmra.mrb[20].mxu0 %vm67_vm2, %v2165_v8  ;;  %v1850_v8 = vpop.f32.mrb[19].mxu1 }
 0x219   :  { %1877 = vmatprep.mubr.msk.bf16.mxu0 %vm2104_vm0, %v2103_v0  ;;  %1874 = vmatpush3.bf16.msra.mxu0 %v1986_v3 }
 0x21a   :  { %1875 = vmatprep.subr.bf16.mxu0 %v2103_v0 }
 0x21d   :  { %1876 = vmatpush3.bf16.msra.mxu0 %v1987_v4 }
 0x21e   :  { %1881 = vmatprep.subr.bf16.mxu0 %v2103_v0 }
 0x2bb   :  { %v2255_v26 = vpop.f32.mrb[4].mxu0 }
 0x2bc   :  { %v1779_v27 = vpop.f32.mrb[5].mxu0 }
 0x2bd   :  { %v264_v28 = vpop.f32.mrb[6].mxu0 }
 0x2be   :  { %v1780_v29 = vpop.f32.mrb[7].mxu0 }
 0x2c7   :  { %v388_v30 = vpop.f32.mrb[8].mxu0 }
 0x2c8   :  { %v773_v32 = vrot.slane %v388_v30, 6  ;;  %v1799_v33 = vpop.f32.mrb[9].mxu0 }
 0x2c9   :  { %v391_v34 = vpop.f32.mrb[10].mxu0 }
 0x2ca   :  { %v791_v35 = vsel %vm790_vm5, %v325_v5, %v773_v32  ;;  %v1800_v36 = vpop.f32.mrb[11].mxu0  ;;  %v818_v5 = vld [vmem:[#allocation5 + $0x148] sm:$0x1]  ;;  %v2105_v32 = vmov 0  }
 0x2cb   :  { %v793_v37 = vsel %vm792_vm6, %v791_v35, %v776_v31  ;;  %v819_v6 = vunpack.c.l.bf16 %v818_v5  ;;  %1947 = vset.pattern.permute.xlu1 %v2105_v32  ;;  %1948 = vset.pattern.permute.xlu0 %v2105_v32 }
 0x2cd   :  { %v823_v7 = vrot.slane %v819_v6, %v2176_v16 }
 0x2d3   :  { %v514_v38 = vpop.f32.mrb[12].mxu0 }
 0x2d4   :  { %v779_v39 = vrot.slane %v514_v38, 2  ;;  %v1819_v40 = vpop.f32.mrb[13].mxu0 }
 0x2d5   :  { %v517_v41 = vpop.f32.mrb[14].mxu0 }
 0x2d6   :  { %v2260_v42 = vsel %vm794_vm7, %v793_v37, %v779_v39  ;;  %v1820_v43 = vpop.f32.mrb[15].mxu0 }
 0x2d7   :  { %v805_v58 = vadd.f32 %v2265_v54, %v2260_v42 }
 0x2d9   :  { %v807_v63 = vmax.f32 %v805_v58, 0.0 }
 0x2df   :  { %v640_v44 = vpop.f32.mrb[16].mxu0 }
 0x2e0   :  { %v782_v46 = vrot.slane %v640_v44, 6  ;;  %v1839_v47 = vpop.f32.mrb[17].mxu0 }
 0x2e1   :  { %v643_v48 = vpop.f32.mrb[18].mxu0 }
 0x2e2   :  { %v796_v50 = vsel %vm790_vm5, %v577_v14, %v782_v46  ;;  %v1840_v51 = vpop.f32.mrb[19].mxu0 }
 0x2e3   :  { %v797_v52 = vsel %vm792_vm6, %v796_v50, %v785_v45 }
 0x2eb   :  { %v766_v55 = vpop.f32.mrb[20].mxu0 }
 0x2ec   :  { %v788_v56 = vrot.slane %v766_v55, 2  ;;  %v1859_v57 = vpop.f32.mrb[21].mxu0 }
 0x2ed   :  { %v769_v59 = vpop.f32.mrb[22].mxu0 }
 0x2ee   :  { %v2270_v60 = vsel %vm794_vm7, %v797_v52, %v788_v56  ;;  %v1860_v61 = vpop.f32.mrb[23].mxu0 }
 0x2ef   :  { %v806_v62 = vadd.f32 %v2265_v54, %v2270_v60 }
 0x2f1   :  { %v808_v1 = vmax.f32 %v806_v62, 0.0 }
 0x2f3   :  { %v809_v2 = vpack.c.bf16 %v808_v1, %v807_v63 }
 0x2f5   :  { %1870 = vmatmul.mubr.msk.bf16.vlgmr.msra.gmra.mrb[20].mxu1 %vm155_vm3, %v809_v2 }
 0x2f6   :  { %1897 = vmatprep.mubr.msk.bf16.mxu1 %vm2104_vm0, %v2103_v0 }
 0x3c8   :  { %v885_v9 = vpop.f32.mrb[20].mxu1 }
 0x3c9   :  { %v886_v10 = vadd.f32 %v885_v9, %v823_v7  ;;  %v1871_v11 = vpop.f32.mrb[21].mxu1 }
 0x3ca   :  { %v888_v12 = vpop.f32.mrb[22].mxu1 }
 0x3cb   :  { %v889_v13 = vadd.f32 %v888_v12, %v823_v7  ;;  %v1872_v14 = vpop.f32.mrb[23].mxu1  ;;  %v892_v15 = vmax.f32 %v886_v10, 0.0 }
 0x3cd   :  { %v893_v17 = vmax.f32 %v889_v13, 0.0 }
 0x3cf   :  { %v894_v18 = vpack.c.bf16 %v893_v17, %v892_v15 }
 0x3d1   :  { %1878 = vmatmul.mubr.msk.bf16.vlgmr.msra.gmra.mrb[24].mxu0 %vm223_vm4, %v894_v18 }
 0x3d2   :  { %1889 = vmatprep.mubr.msk.bf16.mxu0 %vm2104_vm0, %v2103_v0 }
 0x4a4   :  { %v954_v22 = vpop.f32.mrb[24].mxu0 }
 0x4a5   :  { %v955_v8 = vadd.f32 %v954_v22, %v904_v21  ;;  %v1879_v23 = vpop.f32.mrb[25].mxu0 }
 0x4a6   :  { %v957_v24 = vpop.f32.mrb[26].mxu0 }
 0x4a7   :  { %v961_v25 = vmax.f32 %v955_v8, 0.0  ;;  %v958_v27 = vadd.f32 %v957_v24, %v904_v21  ;;  %v1880_v28 = vpop.f32.mrb[27].mxu0 }
 0x4a9   :  { %v962_v29 = vmax.f32 %v958_v27, 0.0  ;;  %v964_v30 = vsel %vm963_vm8, %v961_v25, 0.0 }
 0x4aa   :  { %965 = vadd.xlane.f32.xlu0 %v964_v30 }
 0x4ab   :  { %v967_v31 = vsel %vm963_vm8, %v962_v29, 0.0 }
 0x4ae   :  { %968 = vadd.xlane.f32.xlu0 %v967_v31 }
 0x537   :  { %v966_v33 = vpop.xlane.xlu0 %965 }
 0x538   :  { %v971_v34 = vrot.slane %v966_v33, 2  ;;  %v974_v36 = vrot.slane %v966_v33, 4  ;;  %v977_v38 = vrot.slane %v966_v33, 6 }
 0x53a   :  { %v973_v35 = vmax.f32 %v966_v33, %v971_v34 }
 0x53b   :  { %v969_v39 = vpop.xlane.xlu0 %968 }
 0x53c   :  { %v976_v37 = vmax.f32 %v973_v35, %v974_v36  ;;  %v982_v43 = vrot.slane %v969_v39, 2  ;;  %v985_v45 = vrot.slane %v969_v39, 4  ;;  %v988_v47 = vrot.slane %v969_v39, 6 }
 0x53e   :  { %v979_v40 = vmax.f32 %v976_v37, %v977_v38 }
 0x540   :  { %v980_v41 = vmax.f32 %v979_v40, %v969_v39 }
 0x542   :  { %v984_v44 = vmax.f32 %v980_v41, %v982_v43 }
 0x544   :  { %v987_v46 = vmax.f32 %v984_v44, %v985_v45 }
 0x546   :  { %v990_v48 = vmax.f32 %v987_v46, %v988_v47 }
 0x548   :  { %v995_v49 = vrot.slane %v990_v48, 6  ;;  %v1000_v50 = vrot.slane %v990_v48, 4  ;;  %v991_v51 = vsub.f32 %v966_v33, %v990_v48  ;;  %v1005_v52 = vrot.slane %v990_v48, 2 }
 0x549   :  { %v1010_v63 = vsub.f32 %v969_v39, %v990_v48 }
 0x54a   :  { %v992_v53 = vmul.f32 1.442695, %v991_v51  ;;  %v997_v55 = vsub.f32 %v966_v33, %v995_v49  ;;  %v1002_v56 = vsub.f32 %v966_v33, %v1000_v50  ;;  %v1007_v57 = vsub.f32 %v966_v33, %v1005_v52 }
 0x54b   :  { %v1013_v61 = vsub.f32 %v969_v39, %v995_v49  ;;  %v1016_v1 = vsub.f32 %v969_v39, %v1000_v50  ;;  %v1019_v3 = vsub.f32 %v969_v39, %v1005_v52  ;;  %v1011_v4 = vmul.f32 1.442695, %v1010_v63  ;;  %v1988_v52 = vld [vmem:[#allocation5 + $0x168] sm:$0xff]  }
 0x54c   :  { %v998_v58 = vmul.f32 1.442695, %v997_v55  ;;  %v1003_v59 = vmul.f32 1.442695, %v1002_v56  ;;  %v1008_v62 = vmul.f32 1.442695, %v1007_v57  ;;  %2003 = vpow2.f32 %v992_v53  ;;  %1882 = vmatpush3.bf16.msra.mxu0 %v1988_v52 }
 0x54d   :  { %v1014_v2 = vmul.f32 1.442695, %v1013_v61  ;;  %v1017_v5 = vmul.f32 1.442695, %v1016_v1  ;;  %v1020_v6 = vmul.f32 1.442695, %v1019_v3  ;;  %1883 = vmatprep.subr.bf16.mxu0 %v2103_v0 }
 0x54e   :  { %2005 = vpow2.f32 %v998_v58  ;;  %v1989_v53 = vld [vmem:[#allocation5 + $0x170] sm:$0xff]   ;;  %v1990_v55 = vld [vmem:[#allocation5 + $0x178] sm:$0xff]   ;;  %v1991_v56 = vld [vmem:[#allocation5 + $0x180] sm:$0xff]  }
 0x54f   :  { %2007 = vpow2.f32 %v1003_v59 }
 0x550   :  { %2009 = vpow2.f32 %v1008_v62  ;;  %1884 = vmatpush3.bf16.msra.mxu0 %v1989_v53 }
 0x551   :  { %2011 = vpow2.f32 %v1014_v2  ;;  %1885 = vmatprep.subr.bf16.mxu0 %v2103_v0 }
 0x552   :  { %2013 = vpow2.f32 %v1011_v4  ;;  %v205_v4 = vld [vmem:[#allocation5 + $0x58] sm:$0x1] }
 0x553   :  { %2015 = vpow2.f32 %v1017_v5  ;;  %v206_v5 = vunpack.c.l.bf16 %v205_v4 }
 0x554   :  { %2017 = vpow2.f32 %v1020_v6  ;;  %1886 = vmatpush3.bf16.msra.mxu0 %v1990_v55  ;;  %v1996_v55 = vld [vmem:[#allocation5 + $0x1c0] sm:$0xff]  }
 0x555   :  { %1887 = vmatprep.subr.bf16.mxu0 %v2103_v0  ;;  %v210_v6 = vrot.slane %v206_v5, %v2176_v16 }
 0x556   :  { %v2004_v7 = vpop.eup %2003 }
 0x558   :  { %v2006_v9 = vpop.eup %2005  ;;  %1888 = vmatpush3.bf16.msra.mxu0 %v1991_v56 }
 0x559   :  { %v2008_v10 = vpop.eup %2007  ;;  %v1023_v11 = vrot.slane %v2006_v9, 2  ;;  %1907 = vmatprep.subr.bf16.mxu0 %v2103_v0 }
 0x55a   :  { %v2010_v12 = vpop.eup %2009  ;;  %v1027_v14 = vrot.slane %v2008_v10, 4 }
 0x55b   :  { %v1025_v13 = vadd.f32 %v2004_v7, %v1023_v11  ;;  %v1031_v17 = vrot.slane %v2010_v12, 6  ;;  %v2012_v18 = vpop.eup %2011  ;;  %v1097_v11 = vld [vmem:[#allocation5 + $0x188] sm:$0x1] }
 0x55c   :  { %v2014_v19 = vpop.eup %2013  ;;  %v1036_v8 = vrot.slane %v2012_v18, 2 }
 0x55d   :  { %v1029_v15 = vadd.f32 %v1027_v14, %v1025_v13  ;;  %v2016_v21 = vpop.eup %2015 }
 0x55e   :  { %v2018_v23 = vpop.eup %2017  ;;  %v1040_v25 = vrot.slane %v2016_v21, 4 }
 0x55f   :  { %v1033_v20 = vadd.f32 %v1031_v17, %v1029_v15  ;;  %v1044_v28 = vrot.slane %v2018_v23, 6 }
 0x561   :  { %v1034_v22 = vadd.f32 %v2014_v19, %v1033_v20 }
 0x563   :  { %v1038_v24 = vadd.f32 %v1036_v8, %v1034_v22 }
 0x565   :  { %v1042_v27 = vadd.f32 %v1040_v25, %v1038_v24 }
 0x567   :  { %v1046_v29 = vadd.f32 %v1044_v28, %v1042_v27  ;;  %v1995_v28 = vld [vmem:[#allocation5 + $0x1b0] sm:$0xff]  }
 0x569   :  { %2019 = vrcp.f32 %v1046_v29  ;;  %v1050_v30 = vrot.slane %v1046_v29, 6  ;;  %v1054_v31 = vrot.slane %v1046_v29, 4  ;;  %v1058_v32 = vrot.slane %v1046_v29, 2  ;;  %v1181_v29 = vld [vmem:[#allocation5 + $0x1a0] sm:$0x1] }
 0x56b   :  { %2021 = vrcp.f32 %v1050_v30  ;;  %v1182_v30 = vunpack.c.l.bf16 %v1181_v29 }
 0x56c   :  { %2023 = vrcp.f32 %v1054_v31 }
 0x56d   :  { %2025 = vrcp.f32 %v1058_v32  ;;  %v1186_v31 = vrot.slane %v1182_v30, %v2176_v16  ;;  %v1531_v30 = vld [vmem:[#allocation5 + $0x208] sm:$0x1] }
 0x573   :  { %v2020_v33 = vpop.eup %2019 }
 0x574   :  { %v1048_v36 = vmul.f32 %v2020_v33, %v2004_v7  ;;  %v1062_v38 = vmul.f32 %v2020_v33, %v2014_v19  ;;  %v1992_v7 = vld [vmem:[#allocation5 + $0x1a8] sm:$0xff]  }
 0x575   :  { %v2022_v34 = vpop.eup %2021 }
 0x576   :  { %v2024_v35 = vpop.eup %2023  ;;  %v1053_v37 = vmul.f32 %v2022_v34, %v2006_v9  ;;  %v1063_v39 = vmul.f32 %v2022_v34, %v2012_v18  ;;  %v262_v9 = vadd.f32 %v2255_v26, %v210_v6  ;;  %v1994_v26 = vld [vmem:[#allocation5 + $0x198] sm:$0xff]  }
 0x577   :  { %v2026_v40 = vpop.eup %2025  ;;  %v1057_v41 = vmul.f32 %v2024_v35, %v2008_v10  ;;  %v1064_v43 = vmul.f32 %v2024_v35, %v2016_v21  ;;  %v1993_v10 = vld [vmem:[#allocation5 + $0x190] sm:$0xff]  }
 0x578   :  { %v1061_v44 = vmul.f32 %v2026_v40, %v2010_v12  ;;  %v1066_v45 = vsel %vm790_vm5, %v1048_v36, %v1053_v37  ;;  %v1069_v46 = vsel %vm790_vm5, %v1062_v38, %v1063_v39  ;;  %v1065_v50 = vmul.f32 %v2026_v40, %v2018_v23  ;;  %1894 = vmatpush3.bf16.msra.mxu1 %v1993_v10 }
 0x579   :  { %v1067_v47 = vsel %vm792_vm6, %v1066_v45, %v1057_v41  ;;  %v1070_v49 = vsel %vm792_vm6, %v1069_v46, %v1064_v43  ;;  %1895 = vmatprep.subr.bf16.mxu1 %v2103_v0  ;;  %v1098_v12 = vunpack.c.l.bf16 %v1097_v11 }
 0x57a   :  { %v1068_v48 = vsel %vm794_vm7, %v1067_v47, %v1061_v44  ;;  %v1071_v51 = vsel %vm794_vm7, %v1070_v49, %v1065_v50 }
 0x57b   :  { %1074 = vperm.xlu1 %1947, %v1068_v48   ;;  %v1102_v13 = vrot.slane %v1098_v12, %v2176_v16 }
 0x57c   :  { %1896 = vmatpush3.bf16.msra.mxu1 %v1994_v26 }
 0x57d   :  { %1901 = vmatprep.subr.bf16.mxu1 %v2103_v0 }
 0x57f   :  { %1079 = vperm.xlu1 %1947, %v1071_v51  }
 0x5fa   :  { %v1075_v57 = vpop.permute.xlu1 %1074 }
 0x5fb   :  { %v1082_v58 = vmul.f32 %v1075_v57, %v2260_v42  ;;  %v1997_v57 = vld [vmem:[#allocation5 + $0x1c8] sm:$0xff]  }
 0x5fd   :  { %v1084_v61 = vadd.f32 %v1082_v58, %v2265_v54  ;;  %v1998_v58 = vld [vmem:[#allocation5 + $0x1d0] sm:$0xff]  }
 0x5fe   :  { %v1080_v59 = vpop.permute.xlu1 %1079 }
 0x5ff   :  { %v1083_v62 = vmul.f32 %v1080_v59, %v2270_v60  ;;  %v1086_v1 = vmax.f32 %v1084_v61, 0.0  ;;  %v1999_v59 = vld [vmem:[#allocation5 + $0x1d8] sm:$0xff]   ;;  %v2000_v61 = vld [vmem:[#allocation5 + $0x1e8] sm:$0xff]  }
 0x601   :  { %v1085_v63 = vadd.f32 %v1083_v62, %v2265_v54  ;;  %v267_v54 = vmax.f32 %v262_v9, 0.0  ;;  %v1370_v62 = vld [vmem:[#allocation5 + $0x1b8] sm:$0x1] }
 0x603   :  { %v1087_v2 = vmax.f32 %v1085_v63, 0.0  ;;  %v1270_v60 = vpack.c.bf16 %v267_v54, %v267_v54  ;;  %v1371_v63 = vunpack.c.l.bf16 %v1370_v62  ;;  %v2001_v54 = vld [vmem:[#allocation5 + $0x1f0] sm:$0xff]  }
 0x605   :  { %v1088_v3 = vpack.c.bf16 %v1087_v2, %v1086_v1  ;;  %v1375_v1 = vrot.slane %v1371_v63, %v2176_v16 }
 0x607   :  { %1104 = vrot.lane.b32.xlu0 %v1088_v3, %s2101_s0 }
 0x679   :  { %v1105_v42 = vpop.permute.xlu0 %1104 }
 0x67a   :  { %1890 = vmatmul.mubr.msk.bf16.vlgmr.msra.gmra.mrb[28].mxu0 %vm155_vm3, %v1105_v42 }
 0x67b   :  { %1908 = vmatpush3.bf16.msra.mxu0 %v1992_v7  ;;  %1909 = vmatprep.mubr.msk.bf16.mxu0 %vm2104_vm0, %v2103_v0 }
 0x67c   :  { %1925 = vmatprep.subr.bf16.mxu0 %v2103_v0 }
 0x682   :  { %1910 = vmatmul.mubr.msk.bf16.vlgmr.msra.gmra.mrb[32].mxu0 %vm963_vm8, %v1270_v60  ;;  %v1387_v60 = vld [vmem:[#allocation5 + $0x1e0] sm:$0x1] }
 0x683   :  { %1929 = vmatprep.mubr.msk.bf16.mxu0 %vm2104_vm0, %v2103_v0  ;;  %1926 = vmatpush3.bf16.msra.mxu0 %v2000_v61  ;;  %v1388_v10 = vunpack.c.l.bf16 %v1387_v60 }
 0x684   :  { %1927 = vmatprep.subr.bf16.mxu0 %v2103_v0 }
 0x685   :  { %v1392_v26 = vrot.slane %v1388_v10, %v2176_v16 }
 0x687   :  { %1928 = vmatpush3.bf16.msra.mxu0 %v2001_v54 }
 0x688   :  { %1933 = vmatprep.subr.bf16.mxu0 %v2103_v0 }
 0x74d   :  { %v1167_v14 = vpop.f32.mrb[28].mxu0 }
 0x74e   :  { %v1168_v15 = vadd.f32 %v1167_v14, %v1102_v13  ;;  %v1891_v17 = vpop.f32.mrb[29].mxu0 }
 0x74f   :  { %v1170_v18 = vpop.f32.mrb[30].mxu0 }
 0x750   :  { %v1171_v19 = vadd.f32 %v1170_v18, %v1102_v13  ;;  %v1892_v20 = vpop.f32.mrb[31].mxu0  ;;  %v1174_v21 = vmax.f32 %v1168_v15, 0.0  ;;  %v2002_v18 = vld [vmem:[#allocation5 + $0x200] sm:$0xff]  }
 0x751   :  { %v1466_v20 = vld [vmem:[#allocation5 + $0x1f8] sm:$0x1] }
 0x752   :  { %v1175_v22 = vmax.f32 %v1171_v19, 0.0 }
 0x754   :  { %v1176_v8 = vpack.c.bf16 %v1175_v22, %v1174_v21  ;;  %v1467_v21 = vunpack.c.l.bf16 %v1466_v20 }
 0x755   :  { %v1364_v23 = vpop.f32.mrb[32].mxu0 }
 0x756   :  { %1898 = vmatmul.mubr.msk.bf16.vlgmr.msra.gmra.mrb[24].mxu1 %vm223_vm4, %v1176_v8  ;;  %v1911_v24 = vpop.f32.mrb[33].mxu0  ;;  %v1471_v22 = vrot.slane %v1467_v21, %v2176_v16 }
 0x757   :  { %v1367_v25 = vpop.f32.mrb[34].mxu0  ;;  %1903 = vmatprep.mubr.msk.bf16.mxu1 %vm2104_vm0, %v2103_v0  ;;  %1902 = vmatpush3.bf16.msra.mxu1 %v1995_v28 }
 0x758   :  { %v1912_v27 = vpop.f32.mrb[35].mxu0  ;;  %1913 = vmatprep.subr.bf16.mxu1 %v2103_v0 }
 0x829   :  { %v1236_v32 = vpop.f32.mrb[24].mxu1 }
 0x82a   :  { %v1237_v33 = vadd.f32 %v1236_v32, %v1186_v31  ;;  %v1899_v34 = vpop.f32.mrb[25].mxu1 }
 0x82b   :  { %v1239_v35 = vpop.f32.mrb[26].mxu1 }
 0x82c   :  { %v1243_v36 = vmax.f32 %v1237_v33, 0.0  ;;  %v1900_v37 = vpop.f32.mrb[27].mxu1  ;;  %v1240_v39 = vadd.f32 %v1239_v35, %v1186_v31  ;;  %v1532_v31 = vunpack.c.l.bf16 %v1531_v30 }
 0x82e   :  { %v1246_v38 = vrot.slane %v1243_v36, 2  ;;  %v1249_v41 = vrot.slane %v1243_v36, 4  ;;  %v1252_v44 = vrot.slane %v1243_v36, 6  ;;  %v1244_v45 = vmax.f32 %v1240_v39, 0.0 }
 0x82f   :  { %v1536_v32 = vrot.slane %v1532_v31, %v2176_v16 }
 0x830   :  { %v1248_v40 = vadd.f32 %v1246_v38, %v1243_v36  ;;  %v1257_v48 = vrot.slane %v1244_v45, 2  ;;  %v1260_v50 = vrot.slane %v1244_v45, 4  ;;  %v1263_v52 = vrot.slane %v1244_v45, 6 }
 0x832   :  { %v1251_v43 = vadd.f32 %v1249_v41, %v1248_v40 }
 0x834   :  { %v1254_v46 = vadd.f32 %v1252_v44, %v1251_v43 }
 0x836   :  { %v1255_v47 = vadd.f32 %v1254_v46, %v1244_v45 }
 0x838   :  { %v1259_v49 = vadd.f32 %v1257_v48, %v1255_v47 }
 0x83a   :  { %v1262_v51 = vadd.f32 %v1260_v50, %v1259_v49 }
 0x83c   :  { %v1265_v53 = vadd.f32 %v1263_v52, %v1262_v51 }
 0x83e   :  { %v1271_v56 = vpack.c.bf16 %v1265_v53, %v1265_v53 }
 0x840   :  { %1904 = vmatmul.mubr.msk.bf16.vlgmr.msra.gmra.mrb[28].mxu1 %vm963_vm8, %v1271_v56 }
 0x841   :  { %1914 = vmatpush3.bf16.msra.mxu1 %v1996_v55  ;;  %1921 = vmatprep.mubr.msk.bf16.mxu1 %vm2104_vm0, %v2103_v0 }
 0x842   :  { %1915 = vmatprep.subr.bf16.mxu1 %v2103_v0 }
 0x845   :  { %1916 = vmatpush3.bf16.msra.mxu1 %v1997_v57 }
 0x846   :  { %1917 = vmatprep.subr.bf16.mxu1 %v2103_v0 }
 0x849   :  { %1918 = vmatpush3.bf16.msra.mxu1 %v1998_v58 }
 0x84a   :  { %1919 = vmatprep.subr.bf16.mxu1 %v2103_v0 }
 0x84d   :  { %1920 = vmatpush3.bf16.msra.mxu1 %v1999_v59 }
 0x913   :  { %v1315_v2 = vpop.f32.mrb[28].mxu1 }
 0x914   :  { %v1365_v3 = vadd.f32 %v1364_v23, %v1315_v2  ;;  %v1905_v4 = vpop.f32.mrb[29].mxu1 }
 0x915   :  { %v1318_v5 = vpop.f32.mrb[30].mxu1 }
 0x916   :  { %v1376_v6 = vadd.f32 %v1375_v1, %v1365_v3  ;;  %v1906_v7 = vpop.f32.mrb[31].mxu1 }
 0x918   :  { %v1377_v9 = vmax.f32 %v1376_v6, 0.0 }
 0x91a   :  { %v1378_v42 = vpack.c.bf16 %v1377_v9, %v1377_v9 }
 0x91c   :  { %1922 = vmatmul.mubr.msk.bf16.vlgmr.msra.gmra.mrb[32].mxu1 %vm155_vm3, %v1378_v42 }
 0x9ef   :  { %v1454_v11 = vpop.f32.mrb[32].mxu1 }
 0x9f0   :  { %v1455_v12 = vadd.f32 %v1454_v11, %v1392_v26  ;;  %v1923_v13 = vpop.f32.mrb[33].mxu1 }
 0x9f1   :  { %v1457_v14 = vpop.f32.mrb[34].mxu1 }
 0x9f2   :  { %v1460_v15 = vmax.f32 %v1455_v12, 0.0  ;;  %v1924_v17 = vpop.f32.mrb[35].mxu1 }
 0x9f4   :  { %v1461_v19 = vpack.c.bf16 %v1460_v15, %v1460_v15 }
 0x9f6   :  { %1930 = vmatmul.mubr.msk.bf16.vlgmr.msra.gmra.mrb[36].mxu0 %vm223_vm4, %v1461_v19 }
 0x9f7   :  { %1934 = vmatpush3.bf16.msra.mxu0 %v2002_v18  ;;  %1935 = vmatprep.mubr.msk.bf16.mxu0 %vm2104_vm0, %v2103_v0 }
 0xac9   :  { %v1521_v8 = vpop.f32.mrb[36].mxu0 }
 0xaca   :  { %v1522_v23 = vadd.f32 %v1521_v8, %v1471_v22  ;;  %v1931_v24 = vpop.f32.mrb[37].mxu0 }
 0xacb   :  { %v1524_v25 = vpop.f32.mrb[38].mxu0 }
 0xacc   :  { %v1527_v27 = vmax.f32 %v1522_v23, 0.0  ;;  %v1932_v28 = vpop.f32.mrb[39].mxu0 }
 0xace   :  { %v1528_v29 = vpack.c.bf16 %v1527_v27, %v1527_v27 }
 0xad0   :  { %1936 = vmatmul.mubr.msk.bf16.vlgmr.msra.gmra.mrb[40].mxu0 %vm963_vm8, %v1528_v29 }
 0xba3   :  { %v1580_v0 = vpop.f32.mrb[40].mxu0 }
 0xba4   :  { %v1581_v33 = vadd.f32 %v1580_v0, %v1536_v32  ;;  %v1937_v34 = vpop.f32.mrb[41].mxu0 }
 0xba5   :  { %v1583_v35 = vpop.f32.mrb[42].mxu0 }
 0xba6   :  { %1586 = vst [vmem:[#allocation7] sm:$0x3] %v1581_v33  ;;  %v1938_v36 = vpop.f32.mrb[43].mxu0 }
 0xba7   :  { %2082 = shalt.err (!%p2079_p6)
}
 0xba8   :  { %s2083_s10 = scalar_lea.hbm %s2349_s2, 32 }
 0xba9   :  { %p2084_p7 = scmp.ne.s32.totalorder %s2349_s2, %s2083_s10  ;;  %p2087_p8 = scmp.lt.u32.totalorder %s2083_s10, %s2349_s2 }
 0xbab   :  { %p2089_p9 = pnand %p2087_p8, %p2084_p7 }
 0xbad   :  { %2092 = shalt.err (!%p2089_p9)
}
 0xbae   :  { %1596 = dma.vmem_to_hbm [thread:$0]  %s1594_s6, 32, %s2349_s2, [#allocation4]  }
 0xbaf   :  { %2097 = dma.done.wait [#allocation4], 32  }
 0xbb0   :  { %2098 = vsyncadd [#allocation4], 4294967264 }
 0xbb1   :  { %1600 = vsyncpa [#allocation3], 1 }
 0xbb2   :  { %1601 = vsyncpa [#allocation6], 1 }
 0xbb3   :  { %1602 = vsyncpa [#allocation4], 1 }

// kernel: tpu_custom_call.1
= control target key start
LH: loop header
LB: loop body
LE: loop exit
PB: predicated region body
PF: predicated region fallthrough
CT: control target
= control target key end

     0   :  { %7 = vsyncpa [#allocation3], 0  ;;  %s2347_s0 = inlined_call_operand.hbm [shape: f32[2,38], index: 0, kind: input, shape index: {}]   ;;  %s2348_s1 = inlined_call_operand.hbm [shape: bf16[1056,128], index: 1, kind: input, shape index: {}]   ;;  %s2349_s2 = inlined_call_operand.hbm [shape: f32[2,128], index: 2, kind: output, shape index: {}]  }
   0x1   :  { %8 = vsyncpa [#allocation6], 0 }
   0x2   :  { %9 = vsyncpa [#allocation4], 0  ;;  %s2099_s9 = smov [#allocation2]   ;;  %s2100_s11 = smov [#allocation5]  }
   0x3   :  { %s16_s10 = sshll.u32 %s2099_s9, 4  ;;  %s25_s12 = sshll.u32 %s2100_s11, 4  ;;  %s17_s10 = int_to_ptr.vmem [resolvable:$true] %s16_s10  ;;  %s2122_s12 = int_to_ptr.vmem [resolvable:$true] %s25_s12 }
   0x4   :  { %s2027_s15 = scalar_lea.hbm %s2347_s0, 32 }
   0x5   :  { %p2028_p0 = scmp.ne.s32.totalorder %s2347_s0, %s2027_s15  ;;  %p2031_p1 = scmp.lt.u32.totalorder %s2027_s15, %s2347_s0 }
   0x7   :  { %p2033_p2 = pnand %p2031_p1, %p2028_p0 }
   0x9   :  { %2036 = shalt.err (!%p2033_p2)
}
   0xa   :  { %s2037_s20 = scalar_lea.vmem %s17_s10, 32  ;;  %p2042_p4 = scmp.lt.s32.totalorder %s17_s10, %s17_s10 }
   0xb   :  { %p2038_p3 = scmp.ne.s32.totalorder %s17_s10, %s2037_s20  ;;  %p2043_p5 = scmp.lt.s32.totalorder %s2037_s20, %s2037_s20 }
   0xd   :  { %p2044_p6 = por %p2043_p5, %p2042_p4 }
   0xf   :  { %p2045_p7 = pnand %p2044_p6, %p2038_p3 }
  0x11   :  { %2048 = shalt.err (!%p2045_p7)
}
  0x12   :  { %19 = dma.hbm_to_vmem [thread:$0]  %s2347_s0, 32, %s17_s10, [#allocation3]  }
  0x13   :  { %s2049_s25 = scalar_lea.hbm %s2348_s1, 8448 }
  0x14   :  { %p2050_p8 = scmp.ne.s32.totalorder %s2348_s1, %s2049_s25  ;;  %p2053_p9 = scmp.lt.u32.totalorder %s2049_s25, %s2348_s1 }
  0x16   :  { %p2055_p10 = pnand %p2053_p9, %p2050_p8 }
  0x18   :  { %2058 = shalt.err (!%p2055_p10)
}
  0x19   :  { %s2059_s30 = scalar_lea.vmem %s2122_s12, 8448  ;;  %p2064_p12 = scmp.lt.s32.totalorder %s2122_s12, %s2122_s12 }
  0x1a   :  { %p2060_p11 = scmp.ne.s32.totalorder %s2122_s12, %s2059_s30  ;;  %p2065_p13 = scmp.lt.s32.totalorder %s2059_s30, %s2059_s30 }
  0x1c   :  { %p2066_p0 = por %p2065_p13, %p2064_p12 }
  0x1e   :  { %p2067_p1 = pnand %p2066_p0, %p2060_p11 }
  0x20   :  { %2070 = shalt.err (!%p2067_p1)
}
  0x21   :  { %s2101_s0 = smov 64   ;;  %s2102_s3 = smov 4  }
  0x22   :  { %31 = dma.hbm_to_vmem [thread:$0]  %s2348_s1, 8448, %s2122_s12, [#allocation6], %s2101_s0, %s2101_s0, %s2102_s3  }
  0x23   :  { %2093 = dma.done.wait [#allocation3], 32  }
  0x24   :  { %2094 = vsyncadd [#allocation3], 4294967264 }
  0x25   :  { %2095 = dma.done.wait [#allocation6], 8448  }
  0x26   :  { %2096 = vsyncadd [#allocation6], 4294958848  ;;  %v2103_v0 = vmov 0.0   ;;  %vm2104_vm0 = vmmov 0   ;;  %v1949_v1 = vld [vmem:[#allocation5] sm:$0xff]   ;;  %v1950_v2 = vld [vmem:[#allocation5 + $0x8] sm:$0xff]   ;;  %v48_v12 = vlaneseq }
  0x27   :  { %1751 = vmatprep.subr.bf16.mxu0 %v2103_v0  ;;  %1757 = vmatprep.mubr.msk.bf16.mxu0 %vm2104_vm0, %v2103_v0  ;;  %vm71_vm1 = vcmask 1042432   ;;  %v1951_v3 = vld [vmem:[#allocation5 + $0x10] ss:$0 sps:$4 sm:$0x77]   ;;  %v1952_v4 = vld [vmem:[#allocation5 + $0x20] sm:$0xff]   ;;  %v1953_v6 = vld [vmem:[#allocation5 + $0x28] sm:$0xff]  }
  0x28   :  { %1761 = vmatprep.subr.bf16.mxu1 %v2103_v0  ;;  %1769 = vmatprep.mubr.msk.bf16.mxu1 %vm2104_vm0, %v2103_v0  ;;  %v39_v5 = vld [vmem:[#allocation2] sm:$0x3]  ;;  %v73_v7 = vsel %vm71_vm1, %v1951_v3, 0  ;;  %vm67_vm2 = vcmask 310272   ;;  %v1954_v9 = vld [vmem:[#allocation5 + $0x30] sm:$0xff]   ;;  %v1957_v11 = vld [vmem:[#allocation5 + $0x48] sm:$0xff]  }
  0x29   :  { %1752 = vmatpush3.bf16.msra.mxu0 %v1949_v1  ;;  %1762 = vmatpush3.bf16.msra.mxu1 %v1952_v4  ;;  %v2165_v8 = vpack.c.bf16 %v39_v5, %v39_v5  ;;  %v1955_v10 = vld [vmem:[#allocation5 + $0x38] sm:$0xff]   ;;  %v49_v13 = vshrl.u32 %v48_v12, 7  ;;  %vm155_vm3 = vcmask 523264   ;;  %v1956_v24 = vld [vmem:[#allocation5 + $0x60] sm:$0xff]   ;;  %v1958_v26 = vld [vmem:[#allocation5 + $0x68] sm:$0xff]   ;;  %vm223_vm4 = vcmask 261120  }
  0x2a   :  { %1753 = vmatprep.subr.bf16.mxu0 %v2103_v0  ;;  %1763 = vmatprep.subr.bf16.mxu1 %v2103_v0  ;;  %v46_v14 = vld [vmem:[#allocation5 + $0x18] sm:$0x1]  ;;  %v1959_v27 = vld [vmem:[#allocation5 + $0x50] sm:$0xff]   ;;  %v1966_v32 = vld [vmem:[#allocation5 + $0xa0] ss:$0 sps:$4 sm:$0x77]  }
  0x2b   :  { %v47_v15 = vunpack.c.l.bf16 %v46_v14  ;;  %v2176_v16 = vsub.s32 0, %v49_v13  ;;  %v1960_v28 = vld [vmem:[#allocation5 + $0x70] ss:$0 sps:$4 sm:$0x77]   ;;  %v1964_v31 = vld [vmem:[#allocation5 + $0x98] sm:$0xff]   ;;  %v415_v33 = vsel %vm71_vm1, %v1966_v32, 0 }
  0x2c   :  { %v289_v29 = vsel %vm71_vm1, %v1960_v28, 0  ;;  %v1962_v30 = vld [vmem:[#allocation5 + $0x90] sm:$0xff]   ;;  %v1968_v34 = vld [vmem:[#allocation5 + $0xc0] sm:$0xff]   ;;  %v1970_v35 = vld [vmem:[#allocation5 + $0xc8] sm:$0xff]   ;;  %vm790_vm5 = vcmask 1041408   ;;  %vm792_vm6 = vcmask 1043456  }
  0x2d   :  { %1754 = vmatpush3.bf16.msra.mxu0 %v1950_v2  ;;  %1764 = vmatpush3.bf16.msra.mxu1 %v1953_v6  ;;  %v51_v17 = vrot.slane %v47_v15, %v2176_v16  ;;  %v1972_v36 = vld [vmem:[#allocation5 + $0xd0] ss:$0 sps:$4 sm:$0x77]   ;;  %v1976_v39 = vld [vmem:[#allocation5 + $0xf8] sm:$0xff]   ;;  %v125_v42 = vld [vmem:[#allocation5 + $0x40] sm:$0x1] }
  0x2e   :  { %1755 = vmatprep.subr.bf16.mxu0 %v2103_v0  ;;  %1765 = vmatprep.subr.bf16.mxu1 %v2103_v0  ;;  %v541_v37 = vsel %vm71_vm1, %v1972_v36, 0  ;;  %v1974_v38 = vld [vmem:[#allocation5 + $0xf0] sm:$0xff]   ;;  %v1978_v40 = vld [vmem:[#allocation5 + $0x100] ss:$0 sps:$4 sm:$0x77]   ;;  %v126_v43 = vunpack.c.l.bf16 %v125_v42  ;;  %v1961_v51 = vld [vmem:[#allocation5 + $0x78] sm:$0xff]  }
  0x2f   :  { %v667_v41 = vsel %vm71_vm1, %v1978_v40, 0  ;;  %v1963_v53 = vld [vmem:[#allocation5 + $0x80] sm:$0xff]   ;;  %v1965_v54 = vld [vmem:[#allocation5 + $0x88] ss:$0 sps:$4 sm:$0x77]   ;;  %v1969_v57 = vld [vmem:[#allocation5 + $0xb0] sm:$0xff]  }
  0x30   :  { %v130_v44 = vrot.slane %v126_v43, %v2176_v16  ;;  %v352_v55 = vsel %vm71_vm1, %v1965_v54, 0  ;;  %v1967_v56 = vld [vmem:[#allocation5 + $0xa8] sm:$0xff]   ;;  %v1971_v58 = vld [vmem:[#allocation5 + $0xb8] ss:$0 sps:$4 sm:$0x77]   ;;  %v1975_v61 = vld [vmem:[#allocation5 + $0xe0] sm:$0xff]  }
  0x31   :  { %1756 = vmatpush3.bf16.msra.mxu0 %v73_v7  ;;  %1766 = vmatpush3.bf16.msra.mxu1 %v1954_v9  ;;  %v478_v59 = vsel %vm71_vm1, %v1971_v58, 0  ;;  %v1973_v60 = vld [vmem:[#allocation5 + $0xd8] sm:$0xff]   ;;  %v1977_v62 = vld [vmem:[#allocation5 + $0xe8] ss:$0 sps:$4 sm:$0x77]   ;;  %v1980_v2 = vld [vmem:[#allocation5 + $0x110] sm:$0xff]  }
  0x32   :  { %1773 = vmatprep.subr.bf16.mxu0 %v2103_v0  ;;  %1767 = vmatprep.subr.bf16.mxu1 %v2103_v0  ;;  %v604_v63 = vsel %vm71_vm1, %v1977_v62, 0  ;;  %v1979_v1 = vld [vmem:[#allocation5 + $0x108] sm:$0xff]   ;;  %v1981_v3 = vld [vmem:[#allocation5 + $0x118] ss:$0 sps:$4 sm:$0x77]   ;;  %vm794_vm7 = vcmask 1045504  }
  0x33   :  { %v730_v4 = vsel %vm71_vm1, %v1981_v3, 0  ;;  %v1986_v3 = vld [vmem:[#allocation5 + $0x150] sm:$0xff]   ;;  %vm963_vm8 = vcmask 130048   ;;  %s2106_s1 = smov [#allocation7]  }
  0x34   :  { %1758 = vmatmul.mubr.msk.bf16.vlgmr.msra.gmra.mrb[0].mxu0 %vm67_vm2, %v2165_v8  ;;  %s1593_s6 = sshll.u32 %s2106_s1, 4  ;;  %s1594_s6 = int_to_ptr.vmem [resolvable:$true] %s1593_s6 }
  0x35   :  { %1777 = vmatprep.mubr.msk.bf16.mxu0 %vm2104_vm0, %v2103_v0  ;;  %1768 = vmatpush3.bf16.msra.mxu1 %v1955_v10  ;;  %s2071_s7 = scalar_lea.vmem %s1594_s6, 32  ;;  %p2076_p3 = scmp.lt.s32.totalorder %s1594_s6, %s1594_s6 }
  0x36   :  { %1781 = vmatprep.subr.bf16.mxu1 %v2103_v0  ;;  %1774 = vmatpush3.bf16.msra.mxu0 %v1957_v11  ;;  %p2072_p2 = scmp.ne.s32.totalorder %s1594_s6, %s2071_s7  ;;  %p2077_p4 = scmp.lt.s32.totalorder %s2071_s7, %s2071_s7 }
  0x37   :  { %1775 = vmatprep.subr.bf16.mxu0 %v2103_v0 }
  0x38   :  { %p2078_p5 = por %p2077_p4, %p2076_p3 }
  0x3a   :  { %1776 = vmatpush3.bf16.msra.mxu0 %v1959_v27  ;;  %p2079_p6 = pnand %p2078_p5, %p2072_p2 }
  0x3b   :  { %1791 = vmatprep.subr.bf16.mxu0 %v2103_v0 }
 0x107   :  { %v109_v18 = vpop.f32.mrb[0].mxu0 }
 0x108   :  { %v110_v19 = vadd.f32 %v109_v18, %v51_v17  ;;  %v1759_v20 = vpop.f32.mrb[1].mxu0 }
 0x109   :  { %v112_v21 = vpop.f32.mrb[2].mxu0 }
 0x10a   :  { %v115_v22 = vmax.f32 %v110_v19, 0.0  ;;  %v1760_v23 = vpop.f32.mrb[3].mxu0 }
 0x10b   :  { %v1983_v23 = vld [vmem:[#allocation5 + $0x130] sm:$0xff]  }
 0x10c   :  { %v116_v25 = vpack.c.bf16 %v115_v22, %v115_v22  ;;  %v1982_v22 = vld [vmem:[#allocation5 + $0x128] sm:$0xff]  }
 0x10e   :  { %1770 = vmatmul.mubr.msk.bf16.vlgmr.msra.gmra.mrb[0].mxu1 %vm155_vm3, %v116_v25  ;;  %v1985_v25 = vld [vmem:[#allocation5 + $0x140] sm:$0xff]  }
 0x10f   :  { %1782 = vmatpush3.bf16.msra.mxu1 %v1956_v24  ;;  %1787 = vmatprep.mubr.msk.bf16.mxu1 %vm2104_vm0, %v2103_v0  ;;  %v1984_v24 = vld [vmem:[#allocation5 + $0x138] sm:$0xff]  }
 0x110   :  { %1783 = vmatprep.subr.bf16.mxu1 %v2103_v0 }
 0x113   :  { %1784 = vmatpush3.bf16.msra.mxu1 %v1958_v26 }
 0x114   :  { %1785 = vmatprep.subr.bf16.mxu1 %v2103_v0 }
 0x117   :  { %1786 = vmatpush3.bf16.msra.mxu1 %v289_v29 }
 0x118   :  { %1801 = vmatprep.subr.bf16.mxu1 %v2103_v0 }
 0x11a   :  { %1788 = vmatmul.mubr.msk.bf16.vlgmr.msra.gmra.mrb[4].mxu1 %vm67_vm2, %v2165_v8 }
 0x11b   :  { %1807 = vmatprep.mubr.msk.bf16.mxu1 %vm2104_vm0, %v2103_v0  ;;  %1802 = vmatpush3.bf16.msra.mxu1 %v1962_v30 }
 0x11c   :  { %1803 = vmatprep.subr.bf16.mxu1 %v2103_v0 }
 0x11f   :  { %1804 = vmatpush3.bf16.msra.mxu1 %v1964_v31 }
 0x120   :  { %1805 = vmatprep.subr.bf16.mxu1 %v2103_v0 }
 0x123   :  { %1806 = vmatpush3.bf16.msra.mxu1 %v415_v33 }
 0x124   :  { %1821 = vmatprep.subr.bf16.mxu1 %v2103_v0 }
 0x126   :  { %1808 = vmatmul.mubr.msk.bf16.vlgmr.msra.gmra.mrb[8].mxu1 %vm67_vm2, %v2165_v8 }
 0x127   :  { %1822 = vmatpush3.bf16.msra.mxu1 %v1968_v34  ;;  %1827 = vmatprep.mubr.msk.bf16.mxu1 %vm2104_vm0, %v2103_v0 }
 0x128   :  { %1823 = vmatprep.subr.bf16.mxu1 %v2103_v0 }
 0x12b   :  { %1824 = vmatpush3.bf16.msra.mxu1 %v1970_v35 }
 0x12c   :  { %1825 = vmatprep.subr.bf16.mxu1 %v2103_v0 }
 0x12f   :  { %1826 = vmatpush3.bf16.msra.mxu1 %v541_v37 }
 0x130   :  { %1841 = vmatprep.subr.bf16.mxu1 %v2103_v0 }
 0x132   :  { %1828 = vmatmul.mubr.msk.bf16.vlgmr.msra.gmra.mrb[12].mxu1 %vm67_vm2, %v2165_v8 }
 0x133   :  { %1842 = vmatpush3.bf16.msra.mxu1 %v1974_v38  ;;  %1847 = vmatprep.mubr.msk.bf16.mxu1 %vm2104_vm0, %v2103_v0 }
 0x134   :  { %1843 = vmatprep.subr.bf16.mxu1 %v2103_v0 }
 0x137   :  { %1844 = vmatpush3.bf16.msra.mxu1 %v1976_v39 }
 0x138   :  { %1845 = vmatprep.subr.bf16.mxu1 %v2103_v0 }
 0x13b   :  { %1846 = vmatpush3.bf16.msra.mxu1 %v667_v41 }
 0x13c   :  { %1861 = vmatprep.subr.bf16.mxu1 %v2103_v0 }
 0x13e   :  { %1848 = vmatmul.mubr.msk.bf16.vlgmr.msra.gmra.mrb[16].mxu1 %vm67_vm2, %v2165_v8 }
 0x13f   :  { %1869 = vmatprep.mubr.msk.bf16.mxu1 %vm2104_vm0, %v2103_v0  ;;  %1862 = vmatpush3.bf16.msra.mxu1 %v1982_v22 }
 0x140   :  { %1863 = vmatprep.subr.bf16.mxu1 %v2103_v0 }
 0x143   :  { %1864 = vmatpush3.bf16.msra.mxu1 %v1983_v23 }
 0x144   :  { %1865 = vmatprep.subr.bf16.mxu1 %v2103_v0 }
 0x147   :  { %1866 = vmatpush3.bf16.msra.mxu1 %v1984_v24 }
 0x148   :  { %1867 = vmatprep.subr.bf16.mxu1 %v2103_v0 }
 0x14b   :  { %1868 = vmatpush3.bf16.msra.mxu1 %v1985_v25 }
 0x14c   :  { %1893 = vmatprep.subr.bf16.mxu1 %v2103_v0 }
 0x1e1   :  { %v193_v45 = vpop.f32.mrb[0].mxu1 }
 0x1e2   :  { %v194_v46 = vadd.f32 %v193_v45, %v130_v44  ;;  %v1771_v47 = vpop.f32.mrb[1].mxu1 }
 0x1e3   :  { %v196_v48 = vpop.f32.mrb[2].mxu1 }
 0x1e4   :  { %v199_v49 = vmax.f32 %v194_v46, 0.0  ;;  %v1772_v50 = vpop.f32.mrb[3].mxu1 }
 0x1e6   :  { %v200_v52 = vpack.c.bf16 %v199_v49, %v199_v49  ;;  %v799_v49 = vld [vmem:[#allocation5 + $0x120] sm:$0x1] }
 0x1e8   :  { %1778 = vmatmul.mubr.msk.bf16.vlgmr.msra.gmra.mrb[4].mxu0 %vm223_vm4, %v200_v52 }
 0x1e9   :  { %1792 = vmatpush3.bf16.msra.mxu0 %v1961_v51  ;;  %1797 = vmatprep.mubr.msk.bf16.mxu0 %vm2104_vm0, %v2103_v0 }
 0x1ea   :  { %1793 = vmatprep.subr.bf16.mxu0 %v2103_v0 }
 0x1ed   :  { %1794 = vmatpush3.bf16.msra.mxu0 %v1963_v53  ;;  %v325_v5 = vpop.f32.mrb[4].mxu1  ;;  %v800_v53 = vunpack.c.l.bf16 %v799_v49 }
 0x1ee   :  { %1795 = vmatprep.subr.bf16.mxu0 %v2103_v0  ;;  %v1789_v6 = vpop.f32.mrb[5].mxu1 }
 0x1ef   :  { %v328_v7 = vpop.f32.mrb[6].mxu1  ;;  %v2265_v54 = vrot.slane %v800_v53, %v2176_v16 }
 0x1f0   :  { %v1790_v9 = vpop.f32.mrb[7].mxu1 }
 0x1f1   :  { %1796 = vmatpush3.bf16.msra.mxu0 %v352_v55 }
 0x1f2   :  { %1811 = vmatprep.subr.bf16.mxu0 %v2103_v0 }
 0x1f4   :  { %1798 = vmatmul.mubr.msk.bf16.vlgmr.msra.gmra.mrb[8].mxu0 %vm67_vm2, %v2165_v8 }
 0x1f5   :  { %1812 = vmatpush3.bf16.msra.mxu0 %v1967_v56  ;;  %1817 = vmatprep.mubr.msk.bf16.mxu0 %vm2104_vm0, %v2103_v0 }
 0x1f6   :  { %1813 = vmatprep.subr.bf16.mxu0 %v2103_v0 }
 0x1f9   :  { %1814 = vmatpush3.bf16.msra.mxu0 %v1969_v57  ;;  %v451_v10 = vpop.f32.mrb[8].mxu1 }
 0x1fa   :  { %1815 = vmatprep.subr.bf16.mxu0 %v2103_v0  ;;  %v1809_v11 = vpop.f32.mrb[9].mxu1  ;;  %v776_v31 = vrot.slane %v451_v10, 4 }
 0x1fb   :  { %v454_v12 = vpop.f32.mrb[10].mxu1 }
 0x1fc   :  { %v1810_v13 = vpop.f32.mrb[11].mxu1 }
 0x1fd   :  { %1816 = vmatpush3.bf16.msra.mxu0 %v478_v59 }
 0x1fe   :  { %1831 = vmatprep.subr.bf16.mxu0 %v2103_v0 }
 0x200   :  { %1818 = vmatmul.mubr.msk.bf16.vlgmr.msra.gmra.mrb[12].mxu0 %vm67_vm2, %v2165_v8 }
 0x201   :  { %1832 = vmatpush3.bf16.msra.mxu0 %v1973_v60  ;;  %1837 = vmatprep.mubr.msk.bf16.mxu0 %vm2104_vm0, %v2103_v0 }
 0x202   :  { %1833 = vmatprep.subr.bf16.mxu0 %v2103_v0 }
 0x205   :  { %1834 = vmatpush3.bf16.msra.mxu0 %v1975_v61  ;;  %v577_v14 = vpop.f32.mrb[12].mxu1 }
 0x206   :  { %1835 = vmatprep.subr.bf16.mxu0 %v2103_v0  ;;  %v1829_v15 = vpop.f32.mrb[13].mxu1 }
 0x207   :  { %v580_v17 = vpop.f32.mrb[14].mxu1 }
 0x208   :  { %v1830_v18 = vpop.f32.mrb[15].mxu1 }
 0x209   :  { %1836 = vmatpush3.bf16.msra.mxu0 %v604_v63 }
 0x20a   :  { %1851 = vmatprep.subr.bf16.mxu0 %v2103_v0 }
 0x20c   :  { %1838 = vmatmul.mubr.msk.bf16.vlgmr.msra.gmra.mrb[16].mxu0 %vm67_vm2, %v2165_v8 }
 0x20d   :  { %1852 = vmatpush3.bf16.msra.mxu0 %v1979_v1  ;;  %1857 = vmatprep.mubr.msk.bf16.mxu0 %vm2104_vm0, %v2103_v0 }
 0x20e   :  { %1853 = vmatprep.subr.bf16.mxu0 %v2103_v0 }
 0x211   :  { %1854 = vmatpush3.bf16.msra.mxu0 %v1980_v2  ;;  %v703_v19 = vpop.f32.mrb[16].mxu1 }
 0x212   :  { %1855 = vmatprep.subr.bf16.mxu0 %v2103_v0  ;;  %v1849_v20 = vpop.f32.mrb[17].mxu1  ;;  %v785_v45 = vrot.slane %v703_v19, 4  ;;  %v899_v19 = vld [vmem:[#allocation5 + $0x160] sm:$0x1] }
 0x213   :  { %v706_v21 = vpop.f32.mrb[18].mxu1  ;;  %v900_v20 = vunpack.c.l.bf16 %v899_v19 }
 0x215   :  { %1856 = vmatpush3.bf16.msra.mxu0 %v730_v4  ;;  %v1987_v4 = vld [vmem:[#allocation5 + $0x158] sm:$0xff]   ;;  %v904_v21 = vrot.slane %v900_v20, %v2176_v16 }
 0x216   :  { %1873 = vmatprep.subr.bf16.mxu0 %v2103_v0 }
 0x218   :  { %1858 = vmatmul.mubr.msk.bf16.vlgmr.msra.gmra.mrb[20].mxu0 %vm67_vm2, %v2165_v8  ;;  %v1850_v8 = vpop.f32.mrb[19].mxu1 }
 0x219   :  { %1877 = vmatprep.mubr.msk.bf16.mxu0 %vm2104_vm0, %v2103_v0  ;;  %1874 = vmatpush3.bf16.msra.mxu0 %v1986_v3 }
 0x21a   :  { %1875 = vmatprep.subr.bf16.mxu0 %v2103_v0 }
 0x21d   :  { %1876 = vmatpush3.bf16.msra.mxu0 %v1987_v4 }
 0x21e   :  { %1881 = vmatprep.subr.bf16.mxu0 %v2103_v0 }
 0x2bb   :  { %v2255_v26 = vpop.f32.mrb[4].mxu0 }
 0x2bc   :  { %v1779_v27 = vpop.f32.mrb[5].mxu0 }
 0x2bd   :  { %v264_v28 = vpop.f32.mrb[6].mxu0 }
 0x2be   :  { %v1780_v29 = vpop.f32.mrb[7].mxu0 }
 0x2c7   :  { %v388_v30 = vpop.f32.mrb[8].mxu0 }
 0x2c8   :  { %v773_v32 = vrot.slane %v388_v30, 6  ;;  %v1799_v33 = vpop.f32.mrb[9].mxu0 }
 0x2c9   :  { %v391_v34 = vpop.f32.mrb[10].mxu0 }
 0x2ca   :  { %v791_v35 = vsel %vm790_vm5, %v325_v5, %v773_v32  ;;  %v1800_v36 = vpop.f32.mrb[11].mxu0  ;;  %v818_v5 = vld [vmem:[#allocation5 + $0x148] sm:$0x1]  ;;  %v2105_v32 = vmov 0  }
 0x2cb   :  { %v793_v37 = vsel %vm792_vm6, %v791_v35, %v776_v31  ;;  %v819_v6 = vunpack.c.l.bf16 %v818_v5  ;;  %1947 = vset.pattern.permute.xlu1 %v2105_v32  ;;  %1948 = vset.pattern.permute.xlu0 %v2105_v32 }
 0x2cd   :  { %v823_v7 = vrot.slane %v819_v6, %v2176_v16 }
 0x2d3   :  { %v514_v38 = vpop.f32.mrb[12].mxu0 }
 0x2d4   :  { %v779_v39 = vrot.slane %v514_v38, 2  ;;  %v1819_v40 = vpop.f32.mrb[13].mxu0 }
 0x2d5   :  { %v517_v41 = vpop.f32.mrb[14].mxu0 }
 0x2d6   :  { %v2260_v42 = vsel %vm794_vm7, %v793_v37, %v779_v39  ;;  %v1820_v43 = vpop.f32.mrb[15].mxu0 }
 0x2d7   :  { %v805_v58 = vadd.f32 %v2265_v54, %v2260_v42 }
 0x2d9   :  { %v807_v63 = vmax.f32 %v805_v58, 0.0 }
 0x2df   :  { %v640_v44 = vpop.f32.mrb[16].mxu0 }
 0x2e0   :  { %v782_v46 = vrot.slane %v640_v44, 6  ;;  %v1839_v47 = vpop.f32.mrb[17].mxu0 }
 0x2e1   :  { %v643_v48 = vpop.f32.mrb[18].mxu0 }
 0x2e2   :  { %v796_v50 = vsel %vm790_vm5, %v577_v14, %v782_v46  ;;  %v1840_v51 = vpop.f32.mrb[19].mxu0 }
 0x2e3   :  { %v797_v52 = vsel %vm792_vm6, %v796_v50, %v785_v45 }
 0x2eb   :  { %v766_v55 = vpop.f32.mrb[20].mxu0 }
 0x2ec   :  { %v788_v56 = vrot.slane %v766_v55, 2  ;;  %v1859_v57 = vpop.f32.mrb[21].mxu0 }
 0x2ed   :  { %v769_v59 = vpop.f32.mrb[22].mxu0 }
 0x2ee   :  { %v2270_v60 = vsel %vm794_vm7, %v797_v52, %v788_v56  ;;  %v1860_v61 = vpop.f32.mrb[23].mxu0 }
 0x2ef   :  { %v806_v62 = vadd.f32 %v2265_v54, %v2270_v60 }
 0x2f1   :  { %v808_v1 = vmax.f32 %v806_v62, 0.0 }
 0x2f3   :  { %v809_v2 = vpack.c.bf16 %v808_v1, %v807_v63 }
 0x2f5   :  { %1870 = vmatmul.mubr.msk.bf16.vlgmr.msra.gmra.mrb[20].mxu1 %vm155_vm3, %v809_v2 }
 0x2f6   :  { %1897 = vmatprep.mubr.msk.bf16.mxu1 %vm2104_vm0, %v2103_v0 }
 0x3c8   :  { %v885_v9 = vpop.f32.mrb[20].mxu1 }
 0x3c9   :  { %v886_v10 = vadd.f32 %v885_v9, %v823_v7  ;;  %v1871_v11 = vpop.f32.mrb[21].mxu1 }
 0x3ca   :  { %v888_v12 = vpop.f32.mrb[22].mxu1 }
 0x3cb   :  { %v889_v13 = vadd.f32 %v888_v12, %v823_v7  ;;  %v1872_v14 = vpop.f32.mrb[23].mxu1  ;;  %v892_v15 = vmax.f32 %v886_v10, 0.0 }
 0x3cd   :  { %v893_v17 = vmax.f32 %v889_v13, 0.0 }
 0x3cf   :  { %v894_v18 = vpack.c.bf16 %v893_v17, %v892_v15 }
 0x3d1   :  { %1878 = vmatmul.mubr.msk.bf16.vlgmr.msra.gmra.mrb[24].mxu0 %vm223_vm4, %v894_v18 }
 0x3d2   :  { %1889 = vmatprep.mubr.msk.bf16.mxu0 %vm2104_vm0, %v2103_v0 }
 0x4a4   :  { %v954_v22 = vpop.f32.mrb[24].mxu0 }
 0x4a5   :  { %v955_v8 = vadd.f32 %v954_v22, %v904_v21  ;;  %v1879_v23 = vpop.f32.mrb[25].mxu0 }
 0x4a6   :  { %v957_v24 = vpop.f32.mrb[26].mxu0 }
 0x4a7   :  { %v961_v25 = vmax.f32 %v955_v8, 0.0  ;;  %v958_v27 = vadd.f32 %v957_v24, %v904_v21  ;;  %v1880_v28 = vpop.f32.mrb[27].mxu0 }
 0x4a9   :  { %v962_v29 = vmax.f32 %v958_v27, 0.0  ;;  %v964_v30 = vsel %vm963_vm8, %v961_v25, 0.0 }
 0x4aa   :  { %965 = vadd.xlane.f32.xlu0 %v964_v30 }
 0x4ab   :  { %v967_v31 = vsel %vm963_vm8, %v962_v29, 0.0 }
 0x4ae   :  { %968 = vadd.xlane.f32.xlu0 %v967_v31 }
 0x537   :  { %v966_v33 = vpop.xlane.xlu0 %965 }
 0x538   :  { %v971_v34 = vrot.slane %v966_v33, 2  ;;  %v974_v36 = vrot.slane %v966_v33, 4  ;;  %v977_v38 = vrot.slane %v966_v33, 6 }
 0x53a   :  { %v973_v35 = vmax.f32 %v966_v33, %v971_v34 }
 0x53b   :  { %v969_v39 = vpop.xlane.xlu0 %968 }
 0x53c   :  { %v976_v37 = vmax.f32 %v973_v35, %v974_v36  ;;  %v982_v43 = vrot.slane %v969_v39, 2  ;;  %v985_v45 = vrot.slane %v969_v39, 4  ;;  %v988_v47 = vrot.slane %v969_v39, 6 }
 0x53e   :  { %v979_v40 = vmax.f32 %v976_v37, %v977_v38 }
 0x540   :  { %v980_v41 = vmax.f32 %v979_v40, %v969_v39 }
 0x542   :  { %v984_v44 = vmax.f32 %v980_v41, %v982_v43 }
 0x544   :  { %v987_v46 = vmax.f32 %v984_v44, %v985_v45 }
 0x546   :  { %v990_v48 = vmax.f32 %v987_v46, %v988_v47 }
 0x548   :  { %v995_v49 = vrot.slane %v990_v48, 6  ;;  %v1000_v50 = vrot.slane %v990_v48, 4  ;;  %v991_v51 = vsub.f32 %v966_v33, %v990_v48  ;;  %v1005_v52 = vrot.slane %v990_v48, 2 }
 0x549   :  { %v1010_v63 = vsub.f32 %v969_v39, %v990_v48 }
 0x54a   :  { %v992_v53 = vmul.f32 1.442695, %v991_v51  ;;  %v997_v55 = vsub.f32 %v966_v33, %v995_v49  ;;  %v1002_v56 = vsub.f32 %v966_v33, %v1000_v50  ;;  %v1007_v57 = vsub.f32 %v966_v33, %v1005_v52 }
 0x54b   :  { %v1013_v61 = vsub.f32 %v969_v39, %v995_v49  ;;  %v1016_v1 = vsub.f32 %v969_v39, %v1000_v50  ;;  %v1019_v3 = vsub.f32 %v969_v39, %v1005_v52  ;;  %v1011_v4 = vmul.f32 1.442695, %v1010_v63  ;;  %v1988_v52 = vld [vmem:[#allocation5 + $0x168] sm:$0xff]  }
 0x54c   :  { %v998_v58 = vmul.f32 1.442695, %v997_v55  ;;  %v1003_v59 = vmul.f32 1.442695, %v1002_v56  ;;  %v1008_v62 = vmul.f32 1.442695, %v1007_v57  ;;  %2003 = vpow2.f32 %v992_v53  ;;  %1882 = vmatpush3.bf16.msra.mxu0 %v1988_v52 }
 0x54d   :  { %v1014_v2 = vmul.f32 1.442695, %v1013_v61  ;;  %v1017_v5 = vmul.f32 1.442695, %v1016_v1  ;;  %v1020_v6 = vmul.f32 1.442695, %v1019_v3  ;;  %1883 = vmatprep.subr.bf16.mxu0 %v2103_v0 }
 0x54e   :  { %2005 = vpow2.f32 %v998_v58  ;;  %v1989_v53 = vld [vmem:[#allocation5 + $0x170] sm:$0xff]   ;;  %v1990_v55 = vld [vmem:[#allocation5 + $0x178] sm:$0xff]   ;;  %v1991_v56 = vld [vmem:[#allocation5 + $0x180] sm:$0xff]  }
 0x54f   :  { %2007 = vpow2.f32 %v1003_v59 }
 0x550   :  { %2009 = vpow2.f32 %v1008_v62  ;;  %1884 = vmatpush3.bf16.msra.mxu0 %v1989_v53 }
 0x551   :  { %2011 = vpow2.f32 %v1014_v2  ;;  %1885 = vmatprep.subr.bf16.mxu0 %v2103_v0 }
 0x552   :  { %2013 = vpow2.f32 %v1011_v4  ;;  %v205_v4 = vld [vmem:[#allocation5 + $0x58] sm:$0x1] }
 0x553   :  { %2015 = vpow2.f32 %v1017_v5  ;;  %v206_v5 = vunpack.c.l.bf16 %v205_v4 }
 0x554   :  { %2017 = vpow2.f32 %v1020_v6  ;;  %1886 = vmatpush3.bf16.msra.mxu0 %v1990_v55  ;;  %v1996_v55 = vld [vmem:[#allocation5 + $0x1c0] sm:$0xff]  }
 0x555   :  { %1887 = vmatprep.subr.bf16.mxu0 %v2103_v0  ;;  %v210_v6 = vrot.slane %v206_v5, %v2176_v16 }
 0x556   :  { %v2004_v7 = vpop.eup %2003 }
 0x558   :  { %v2006_v9 = vpop.eup %2005  ;;  %1888 = vmatpush3.bf16.msra.mxu0 %v1991_v56 }
 0x559   :  { %v2008_v10 = vpop.eup %2007  ;;  %v1023_v11 = vrot.slane %v2006_v9, 2  ;;  %1907 = vmatprep.subr.bf16.mxu0 %v2103_v0 }
 0x55a   :  { %v2010_v12 = vpop.eup %2009  ;;  %v1027_v14 = vrot.slane %v2008_v10, 4 }
 0x55b   :  { %v1025_v13 = vadd.f32 %v2004_v7, %v1023_v11  ;;  %v1031_v17 = vrot.slane %v2010_v12, 6  ;;  %v2012_v18 = vpop.eup %2011  ;;  %v1097_v11 = vld [vmem:[#allocation5 + $0x188] sm:$0x1] }
 0x55c   :  { %v2014_v19 = vpop.eup %2013  ;;  %v1036_v8 = vrot.slane %v2012_v18, 2 }
 0x55d   :  { %v1029_v15 = vadd.f32 %v1027_v14, %v1025_v13  ;;  %v2016_v21 = vpop.eup %2015 }
 0x55e   :  { %v2018_v23 = vpop.eup %2017  ;;  %v1040_v25 = vrot.slane %v2016_v21, 4 }
 0x55f   :  { %v1033_v20 = vadd.f32 %v1031_v17, %v1029_v15  ;;  %v1044_v28 = vrot.slane %v2018_v23, 6 }
 0x561   :  { %v1034_v22 = vadd.f32 %v2014_v19, %v1033_v20 }
 0x563   :  { %v1038_v24 = vadd.f32 %v1036_v8, %v1034_v22 }
 0x565   :  { %v1042_v27 = vadd.f32 %v1040_v25, %v1038_v24 }
 0x567   :  { %v1046_v29 = vadd.f32 %v1044_v28, %v1042_v27  ;;  %v1995_v28 = vld [vmem:[#allocation5 + $0x1b0] sm:$0xff]  }
 0x569   :  { %2019 = vrcp.f32 %v1046_v29  ;;  %v1050_v30 = vrot.slane %v1046_v29, 6  ;;  %v1054_v31 = vrot.slane %v1046_v29, 4  ;;  %v1058_v32 = vrot.slane %v1046_v29, 2  ;;  %v1181_v29 = vld [vmem:[#allocation5 + $0x1a0] sm:$0x1] }
 0x56b   :  { %2021 = vrcp.f32 %v1050_v30  ;;  %v1182_v30 = vunpack.c.l.bf16 %v1181_v29 }
 0x56c   :  { %2023 = vrcp.f32 %v1054_v31 }
 0x56d   :  { %2025 = vrcp.f32 %v1058_v32  ;;  %v1186_v31 = vrot.slane %v1182_v30, %v2176_v16  ;;  %v1531_v30 = vld [vmem:[#allocation5 + $0x208] sm:$0x1] }
 0x573   :  { %v2020_v33 = vpop.eup %2019 }
 0x574   :  { %v1048_v36 = vmul.f32 %v2020_v33, %v2004_v7  ;;  %v1062_v38 = vmul.f32 %v2020_v33, %v2014_v19  ;;  %v1992_v7 = vld [vmem:[#allocation5 + $0x1a8] sm:$0xff]  }
 0x575   :  { %v2022_v34 = vpop.eup %2021 }
 0x576   :  { %v2024_v35 = vpop.eup %2023  ;;  %v1053_v37 = vmul.f32 %v2022_v34, %v2006_v9  ;;  %v1063_v39 = vmul.f32 %v2022_v34, %v2012_v18  ;;  %v262_v9 = vadd.f32 %v2255_v26, %v210_v6  ;;  %v1994_v26 = vld [vmem:[#allocation5 + $0x198] sm:$0xff]  }
 0x577   :  { %v2026_v40 = vpop.eup %2025  ;;  %v1057_v41 = vmul.f32 %v2024_v35, %v2008_v10  ;;  %v1064_v43 = vmul.f32 %v2024_v35, %v2016_v21  ;;  %v1993_v10 = vld [vmem:[#allocation5 + $0x190] sm:$0xff]  }
 0x578   :  { %v1061_v44 = vmul.f32 %v2026_v40, %v2010_v12  ;;  %v1066_v45 = vsel %vm790_vm5, %v1048_v36, %v1053_v37  ;;  %v1069_v46 = vsel %vm790_vm5, %v1062_v38, %v1063_v39  ;;  %v1065_v50 = vmul.f32 %v2026_v40, %v2018_v23  ;;  %1894 = vmatpush3.bf16.msra.mxu1 %v1993_v10 }
 0x579   :  { %v1067_v47 = vsel %vm792_vm6, %v1066_v45, %v1057_v41  ;;  %v1070_v49 = vsel %vm792_vm6, %v1069_v46, %v1064_v43  ;;  %1895 = vmatprep.subr.bf16.mxu1 %v2103_v0  ;;  %v1098_v12 = vunpack.c.l.bf16 %v1097_v11 }
 0x57a   :  { %v1068_v48 = vsel %vm794_vm7, %v1067_v47, %v1061_v44  ;;  %v1071_v51 = vsel %vm794_vm7, %v1070_v49, %v1065_v50 }
 0x57b   :  { %1074 = vperm.xlu1 %1947, %v1068_v48   ;;  %v1102_v13 = vrot.slane %v1098_v12, %v2176_v16 }
 0x57c   :  { %1896 = vmatpush3.bf16.msra.mxu1 %v1994_v26 }
 0x57d   :  { %1901 = vmatprep.subr.bf16.mxu1 %v2103_v0 }
 0x57f   :  { %1079 = vperm.xlu1 %1947, %v1071_v51  }
 0x5fa   :  { %v1075_v57 = vpop.permute.xlu1 %1074 }
 0x5fb   :  { %v1082_v58 = vmul.f32 %v1075_v57, %v2260_v42  ;;  %v1997_v57 = vld [vmem:[#allocation5 + $0x1c8] sm:$0xff]  }
 0x5fd   :  { %v1084_v61 = vadd.f32 %v1082_v58, %v2265_v54  ;;  %v1998_v58 = vld [vmem:[#allocation5 + $0x1d0] sm:$0xff]  }
 0x5fe   :  { %v1080_v59 = vpop.permute.xlu1 %1079 }
 0x5ff   :  { %v1083_v62 = vmul.f32 %v1080_v59, %v2270_v60  ;;  %v1086_v1 = vmax.f32 %v1084_v61, 0.0  ;;  %v1999_v59 = vld [vmem:[#allocation5 + $0x1d8] sm:$0xff]   ;;  %v2000_v61 = vld [vmem:[#allocation5 + $0x1e8] sm:$0xff]  }
 0x601   :  { %v1085_v63 = vadd.f32 %v1083_v62, %v2265_v54  ;;  %v267_v54 = vmax.f32 %v262_v9, 0.0  ;;  %v1370_v62 = vld [vmem:[#allocation5 + $0x1b8] sm:$0x1] }
 0x603   :  { %v1087_v2 = vmax.f32 %v1085_v63, 0.0  ;;  %v1270_v60 = vpack.c.bf16 %v267_v54, %v267_v54  ;;  %v1371_v63 = vunpack.c.l.bf16 %v1370_v62  ;;  %v2001_v54 = vld [vmem:[#allocation5 + $0x1f0] sm:$0xff]  }
 0x605   :  { %v1088_v3 = vpack.c.bf16 %v1087_v2, %v1086_v1  ;;  %v1375_v1 = vrot.slane %v1371_v63, %v2176_v16 }
 0x607   :  { %1104 = vrot.lane.b32.xlu0 %v1088_v3, %s2101_s0 }
 0x679   :  { %v1105_v42 = vpop.permute.xlu0 %1104 }
 0x67a   :  { %1890 = vmatmul.mubr.msk.bf16.vlgmr.msra.gmra.mrb[28].mxu0 %vm155_vm3, %v1105_v42 }
 0x67b   :  { %1908 = vmatpush3.bf16.msra.mxu0 %v1992_v7  ;;  %1909 = vmatprep.mubr.msk.bf16.mxu0 %vm2104_vm0, %v2103_v0 }
 0x67c   :  { %1925 = vmatprep.subr.bf16.mxu0 %v2103_v0 }
 0x682   :  { %1910 = vmatmul.mubr.msk.bf16.vlgmr.msra.gmra.mrb[32].mxu0 %vm963_vm8, %v1270_v60  ;;  %v1387_v60 = vld [vmem:[#allocation5 + $0x1e0] sm:$0x1] }
 0x683   :  { %1929 = vmatprep.mubr.msk.bf16.mxu0 %vm2104_vm0, %v2103_v0  ;;  %1926 = vmatpush3.bf16.msra.mxu0 %v2000_v61  ;;  %v1388_v10 = vunpack.c.l.bf16 %v1387_v60 }
 0x684   :  { %1927 = vmatprep.subr.bf16.mxu0 %v2103_v0 }
 0x685   :  { %v1392_v26 = vrot.slane %v1388_v10, %v2176_v16 }
 0x687   :  { %1928 = vmatpush3.bf16.msra.mxu0 %v2001_v54 }
 0x688   :  { %1933 = vmatprep.subr.bf16.mxu0 %v2103_v0 }
 0x74d   :  { %v1167_v14 = vpop.f32.mrb[28].mxu0 }
 0x74e   :  { %v1168_v15 = vadd.f32 %v1167_v14, %v1102_v13  ;;  %v1891_v17 = vpop.f32.mrb[29].mxu0 }
 0x74f   :  { %v1170_v18 = vpop.f32.mrb[30].mxu0 }
 0x750   :  { %v1171_v19 = vadd.f32 %v1170_v18, %v1102_v13  ;;  %v1892_v20 = vpop.f32.mrb[31].mxu0  ;;  %v1174_v21 = vmax.f32 %v1168_v15, 0.0  ;;  %v2002_v18 = vld [vmem:[#allocation5 + $0x200] sm:$0xff]  }
 0x751   :  { %v1466_v20 = vld [vmem:[#allocation5 + $0x1f8] sm:$0x1] }
 0x752   :  { %v1175_v22 = vmax.f32 %v1171_v19, 0.0 }
 0x754   :  { %v1176_v8 = vpack.c.bf16 %v1175_v22, %v1174_v21  ;;  %v1467_v21 = vunpack.c.l.bf16 %v1466_v20 }
 0x755   :  { %v1364_v23 = vpop.f32.mrb[32].mxu0 }
 0x756   :  { %1898 = vmatmul.mubr.msk.bf16.vlgmr.msra.gmra.mrb[24].mxu1 %vm223_vm4, %v1176_v8  ;;  %v1911_v24 = vpop.f32.mrb[33].mxu0  ;;  %v1471_v22 = vrot.slane %v1467_v21, %v2176_v16 }
 0x757   :  { %v1367_v25 = vpop.f32.mrb[34].mxu0  ;;  %1903 = vmatprep.mubr.msk.bf16.mxu1 %vm2104_vm0, %v2103_v0  ;;  %1902 = vmatpush3.bf16.msra.mxu1 %v1995_v28 }
 0x758   :  { %v1912_v27 = vpop.f32.mrb[35].mxu0  ;;  %1913 = vmatprep.subr.bf16.mxu1 %v2103_v0 }
 0x829   :  { %v1236_v32 = vpop.f32.mrb[24].mxu1 }
 0x82a   :  { %v1237_v33 = vadd.f32 %v1236_v32, %v1186_v31  ;;  %v1899_v34 = vpop.f32.mrb[25].mxu1 }
 0x82b   :  { %v1239_v35 = vpop.f32.mrb[26].mxu1 }
 0x82c   :  { %v1243_v36 = vmax.f32 %v1237_v33, 0.0  ;;  %v1900_v37 = vpop.f32.mrb[27].mxu1  ;;  %v1240_v39 = vadd.f32 %v1239_v35, %v1186_v31  ;;  %v1532_v31 = vunpack.c.l.bf16 %v1531_v30 }
 0x82e   :  { %v1246_v38 = vrot.slane %v1243_v36, 2  ;;  %v1249_v41 = vrot.slane %v1243_v36, 4  ;;  %v1252_v44 = vrot.slane %v1243_v36, 6  ;;  %v1244_v45 = vmax.f32 %v1240_v39, 0.0 }
 0x82f   :  { %v1536_v32 = vrot.slane %v1532_v31, %v2176_v16 }
 0x830   :  { %v1248_v40 = vadd.f32 %v1246_v38, %v1243_v36  ;;  %v1257_v48 = vrot.slane %v1244_v45, 2  ;;  %v1260_v50 = vrot.slane %v1244_v45, 4  ;;  %v1263_v52 = vrot.slane %v1244_v45, 6 }
 0x832   :  { %v1251_v43 = vadd.f32 %v1249_v41, %v1248_v40 }
 0x834   :  { %v1254_v46 = vadd.f32 %v1252_v44, %v1251_v43 }
 0x836   :  { %v1255_v47 = vadd.f32 %v1254_v46, %v1244_v45 }
 0x838   :  { %v1259_v49 = vadd.f32 %v1257_v48, %v1255_v47 }
 0x83a   :  { %v1262_v51 = vadd.f32 %v1260_v50, %v1259_v49 }
 0x83c   :  { %v1265_v53 = vadd.f32 %v1263_v52, %v1262_v51 }
 0x83e   :  { %v1271_v56 = vpack.c.bf16 %v1265_v53, %v1265_v53 }
 0x840   :  { %1904 = vmatmul.mubr.msk.bf16.vlgmr.msra.gmra.mrb[28].mxu1 %vm963_vm8, %v1271_v56 }
 0x841   :  { %1914 = vmatpush3.bf16.msra.mxu1 %v1996_v55  ;;  %1921 = vmatprep.mubr.msk.bf16.mxu1 %vm2104_vm0, %v2103_v0 }
 0x842   :  { %1915 = vmatprep.subr.bf16.mxu1 %v2103_v0 }
 0x845   :  { %1916 = vmatpush3.bf16.msra.mxu1 %v1997_v57 }
 0x846   :  { %1917 = vmatprep.subr.bf16.mxu1 %v2103_v0 }
 0x849   :  { %1918 = vmatpush3.bf16.msra.mxu1 %v1998_v58 }
 0x84a   :  { %1919 = vmatprep.subr.bf16.mxu1 %v2103_v0 }
 0x84d   :  { %1920 = vmatpush3.bf16.msra.mxu1 %v1999_v59 }
 0x913   :  { %v1315_v2 = vpop.f32.mrb[28].mxu1 }
 0x914   :  { %v1365_v3 = vadd.f32 %v1364_v23, %v1315_v2  ;;  %v1905_v4 = vpop.f32.mrb[29].mxu1 }
 0x915   :  { %v1318_v5 = vpop.f32.mrb[30].mxu1 }
 0x916   :  { %v1376_v6 = vadd.f32 %v1375_v1, %v1365_v3  ;;  %v1906_v7 = vpop.f32.mrb[31].mxu1 }
 0x918   :  { %v1377_v9 = vmax.f32 %v1376_v6, 0.0 }
 0x91a   :  { %v1378_v42 = vpack.c.bf16 %v1377_v9, %v1377_v9 }
 0x91c   :  { %1922 = vmatmul.mubr.msk.bf16.vlgmr.msra.gmra.mrb[32].mxu1 %vm155_vm3, %v1378_v42 }
 0x9ef   :  { %v1454_v11 = vpop.f32.mrb[32].mxu1 }
 0x9f0   :  { %v1455_v12 = vadd.f32 %v1454_v11, %v1392_v26  ;;  %v1923_v13 = vpop.f32.mrb[33].mxu1 }
 0x9f1   :  { %v1457_v14 = vpop.f32.mrb[34].mxu1 }
 0x9f2   :  { %v1460_v15 = vmax.f32 %v1455_v12, 0.0  ;;  %v1924_v17 = vpop.f32.mrb[35].mxu1 }
 0x9f4   :  { %v1461_v19 = vpack.c.bf16 %v1460_v15, %v1460_v15 }
 0x9f6   :  { %1930 = vmatmul.mubr.msk.bf16.vlgmr.msra.gmra.mrb[36].mxu0 %vm223_vm4, %v1461_v19 }
 0x9f7   :  { %1934 = vmatpush3.bf16.msra.mxu0 %v2002_v18  ;;  %1935 = vmatprep.mubr.msk.bf16.mxu0 %vm2104_vm0, %v2103_v0 }
 0xac9   :  { %v1521_v8 = vpop.f32.mrb[36].mxu0 }
 0xaca   :  { %v1522_v23 = vadd.f32 %v1521_v8, %v1471_v22  ;;  %v1931_v24 = vpop.f32.mrb[37].mxu0 }
 0xacb   :  { %v1524_v25 = vpop.f32.mrb[38].mxu0 }
 0xacc   :  { %v1527_v27 = vmax.f32 %v1522_v23, 0.0  ;;  %v1932_v28 = vpop.f32.mrb[39].mxu0 }
 0xace   :  { %v1528_v29 = vpack.c.bf16 %v1527_v27, %v1527_v27 }
 0xad0   :  { %1936 = vmatmul.mubr.msk.bf16.vlgmr.msra.gmra.mrb[40].mxu0 %vm963_vm8, %v1528_v29 }
 0xba3   :  { %v1580_v0 = vpop.f32.mrb[40].mxu0 }
 0xba4   :  { %v1581_v33 = vadd.f32 %v1580_v0, %v1536_v32  ;;  %v1937_v34 = vpop.f32.mrb[41].mxu0 }
 0xba5   :  { %v1583_v35 = vpop.f32.mrb[42].mxu0 }
 0xba6   :  { %1586 = vst [vmem:[#allocation7] sm:$0x3] %v1581_v33  ;;  %v1938_v36 = vpop.f32.mrb[43].mxu0 }
 0xba7   :  { %2082 = shalt.err (!%p2079_p6)
}
 0xba8   :  { %s2083_s10 = scalar_lea.hbm %s2349_s2, 32 }
 0xba9   :  { %p2084_p7 = scmp.ne.s32.totalorder %s2349_s2, %s2083_s10  ;;  %p2087_p8 = scmp.lt.u32.totalorder %s2083_s10, %s2349_s2 }
 0xbab   :  { %p2089_p9 = pnand %p2087_p8, %p2084_p7 }
 0xbad   :  { %2092 = shalt.err (!%p2089_p9)
}
 0xbae   :  { %1596 = dma.vmem_to_hbm [thread:$0]  %s1594_s6, 32, %s2349_s2, [#allocation4]  }
 0xbaf   :  { %2097 = dma.done.wait [#allocation4], 32  }
 0xbb0   :  { %2098 = vsyncadd [#allocation4], 4294967264 }
 0xbb1   :  { %1600 = vsyncpa [#allocation3], 1 }
 0xbb2   :  { %1601 = vsyncpa [#allocation6], 1 }
 0xbb3   :  { %1602 = vsyncpa [#allocation4], 1 }

</bundles_post_ra>
